<compile_context>
chip_gen: v6e
topology: v6e:2x2x1
jax: 0.10.0
libtpu: 0.0.40
codegen_flags: <defaults>
</compile_context>

<pallas_src>
import functools
import math

import jax
import jax.numpy as jnp
from jax.experimental import pallas as pl
from jax.experimental.pallas import tpu as pltpu


_NEG_INF = -1e30  # finite mask sentinel: avoids NaN for fully-masked rows


# ----------------------------- kernel helpers ------------------------------ #
def _layernorm(x, w, b, eps=1e-5):
    mean = jnp.mean(x, axis=-1, keepdims=True)
    var = jnp.mean((x - mean) ** 2, axis=-1, keepdims=True)
    return (x - mean) * jax.lax.rsqrt(var + eps) * w + b


# ------------------------------- the kernel -------------------------------- #
def resblock_kernel(nq, heads,
                    y_ref, mask_ref,
                    ln1w, ln1b, inw, inb, nqw, nqb, outw, outb,
                    ln2w, ln2b, fcw, fcb, pjw, pjb,
                    out_ref):
    """One ResidualAttentionBlock for one (batch tile, layer) grid step.

    Grid = (bs // TILE_B, layers). The output BlockSpec depends only on the
    batch-tile index, so the (TILE_B, seq, d) activation stays resident in VMEM
    across the layer axis and serves as the carry between layers; it is written
    back to HBM once per batch tile.  Weight blocks are indexed by the layer
    axis, so the next layer's weights are DMA-prefetched while this one
    computes, and each weight DMA is amortized over TILE_B batch elements.
    """
    layer = pl.program_id(1)

    @pl.when(layer == 0)
    def _():
        out_ref[...] = y_ref[...]

    tile_b, seq, d = out_ref.shape
    L = seq - nq
    hd = d // heads
    scale = 1.0 / math.sqrt(hd)
    bf16, f32 = jnp.bfloat16, jnp.float32

    # TODO(synk): replace the per-head lane-slice split / lane-concat merge with
    # a single layout-aware pltpu.einshape('n(hd)->hnd', ...) relayout once
    # validated at production shapes (hd >= 64); the slice/concat path below is
    # the conservative, known-good lowering at the tiny smoke-test shapes.
    def split_heads(x):                      # (n, d) -> (heads, n, hd)
        return jnp.concatenate(
            [x[None, :, h * hd:(h + 1) * hd] for h in range(heads)], axis=0)

    # Statically unrolled loop over the TILE_B batch elements resident in this
    # grid step (per-element temporaries don't grow with TILE_B).
    for b in range(tile_b):
        y = out_ref[b]                                        # (seq, d) f32 carry

        # ---- ln_1 + fused attention ----
        ln1 = _layernorm(y, ln1w[...], ln1b[...])
        x_clip = ln1[nq:].astype(bf16)                        # (L, d)  -> q, k, v
        x_mask = ln1[:nq].astype(bf16)                        # (nq, d) -> new_q

        qkv = jnp.dot(x_clip, inw[...], preferred_element_type=f32) + inb[...]
        new_q = jnp.dot(x_mask, nqw[...], preferred_element_type=f32) + nqb[...]

        # fused query tensor: [nq mask-query rows ; L clip rows] -> one QK^T,
        # one softmax, one PV instead of two of each.
        q_full = jnp.concatenate([new_q, qkv[:, :d]], axis=0) * scale  # (seq, d)
        k_full = qkv[:, d:2 * d]                                       # (L, d)
        v_full = qkv[:, 2 * d:]                                        # (L, d)

        # cast to bf16 *before* the head split so the relayout moves half bytes
        q3 = split_heads(q_full.astype(bf16))                 # (heads, seq, hd)
        k3 = split_heads(k_full.astype(bf16))                 # (heads, L, hd)
        v3 = split_heads(v_full.astype(bf16))                 # (heads, L, hd)

        scores = jnp.einsum('hqd,hkd->hqk', q3, k3,
                            preferred_element_type=f32)       # (heads, seq, L)

        # additive mask built in-kernel: only the (nq, L) rows travel over HBM;
        # the L clip-query rows are zeros synthesized here.
        amask = jnp.concatenate(
            [mask_ref[b].astype(f32), jnp.zeros((L, L), f32)], axis=0)  # (seq, L)
        scores = scores + amask[None]

        # TODO(synk): flash-style key tiling of this softmax for production
        # seq*L (avoids two (heads, seq, L) f32 temporaries; matters on v7x's
        # 64 MiB VMEM with heads~16, seq~L~600).
        m = jnp.max(scores, axis=-1, keepdims=True)
        e = jnp.exp(scores - m)
        # approx reciprocal is fine for inference; use approx=False for training.
        p = e * pl.reciprocal(jnp.sum(e, axis=-1, keepdims=True), approx=True)

        pv = jnp.einsum('hqk,hkd->hqd', p.astype(bf16), v3,
                        preferred_element_type=f32)           # (heads, seq, hd)

        # merge heads back to (seq, d) in bf16; single output projection
        attn = jnp.concatenate(
            [pv[h].astype(bf16) for h in range(heads)], axis=-1)       # (seq, d)
        attn_out = jnp.dot(attn, outw[...],
                           preferred_element_type=f32) + outb[...]

        y1 = y + attn_out

        # ---- ln_2 + MLP (QuickGELU) ----
        # TODO(synk): K-tile the fc/pj matmuls (extra inner grid axis + f32 VMEM
        # accumulator) for d >= 1024 on v7x, where double-buffered fc/pj weights
        # no longer fit the 64 MiB/TC VMEM.
        h1 = jnp.dot(_layernorm(y1, ln2w[...], ln2b[...]).astype(bf16), fcw[...],
                     preferred_element_type=f32) + fcb[...]
        h1 = h1 * jax.nn.sigmoid(1.702 * h1)
        mlp_out = jnp.dot(h1.astype(bf16), pjw[...],
                          preferred_element_type=f32) + pjb[...]

        out_ref[b] = y1 + mlp_out             # full, lane-dense store


# --------------------------- host-side preparation -------------------------- #
def prepare_transformer_weights(layer_params):
    """One-time weight prep, hoisted out of the forward pass: stack across
    layers, transpose to (in, out) layout, and pre-cast matmul weights to bf16.
    """
    d = layer_params[0]['ln1_w'].shape[0]
    bf16, f32 = jnp.bfloat16, jnp.float32

    def stack(fn):
        return jnp.stack([fn(p) for p in layer_params], axis=0)

    return (
        stack(lambda p: p['ln1_w'].reshape(1, d).astype(f32)),
        stack(lambda p: p['ln1_b'].reshape(1, d).astype(f32)),
        stack(lambda p: p['in_w'].T.astype(bf16)),
        stack(lambda p: p['in_b'].reshape(1, 3 * d).astype(f32)),
        stack(lambda p: p['nq_w'].T.astype(bf16)),
        stack(lambda p: p['nq_b'].reshape(1, d).astype(f32)),
        stack(lambda p: p['out_w'].T.astype(bf16)),
        stack(lambda p: p['out_b'].reshape(1, d).astype(f32)),
        stack(lambda p: p['ln2_w'].reshape(1, d).astype(f32)),
        stack(lambda p: p['ln2_b'].reshape(1, d).astype(f32)),
        stack(lambda p: p['fc_w'].T.astype(bf16)),
        stack(lambda p: p['fc_b'].reshape(1, 4 * d).astype(f32)),
        stack(lambda p: p['pj_w'].T.astype(bf16)),
        stack(lambda p: p['pj_b'].reshape(1, d).astype(f32)),
    )


def _vmem_limit_bytes():
    """~3/4 of per-core physical VMEM: ~96 MiB on v5e/v6e (128 MiB), 48 MiB on
    v7x (64 MiB). Falls back to the conservative 48 MiB if the query fails."""
    cap = None
    try:
        info = pltpu.get_tpu_info()
        cap = (getattr(info, 'vmem_capacity_bytes', None)
               or getattr(info, 'vmem_bytes', None))
    except Exception:
        cap = None
    if not cap:
        cap = 64 * 1024 * 1024
    return int(min(cap * 3 // 4, 112 * 1024 * 1024))


def _pick_tile_b(bs, seq, nq, L, d, heads, per_layer_w_bytes, vmem_limit):
    """Largest TILE_B (<=4, dividing bs) whose rough VMEM footprint fits."""
    def est(tb):
        f32b, bf16b = 4, 2
        blocks = tb * seq * d * f32b * 2 + tb * nq * L * bf16b   # act in/out + mask
        pipelined = 2 * (blocks + per_layer_w_bytes)             # double-buffered
        scores = heads * seq * L * f32b * 2                      # per-element temps
        proj = L * 3 * d * f32b + seq * d * f32b + 3 * seq * d * bf16b
        mlp = seq * 4 * d * f32b * 2
        return pipelined + scores + proj + mlp

    for tb in (4, 3, 2, 1):
        if bs % tb == 0 and est(tb) <= int(0.7 * vmem_limit):
            return tb
    return 1


# ------------------------------ pallas wrapper ------------------------------ #
def transformer_pallas(y_sbd, attn_mask_bool, stacked_weights, heads):
    """Mirrors Transformer.forward.

    y_sbd           : (seq, bs, width) float32  (PyTorch layout)
    attn_mask_bool  : (bs, nq, L) bool          (True = masked)
    stacked_weights : output of prepare_transformer_weights (hoisted prep)
    """
    seq, bs, d = y_sbd.shape
    nq = attn_mask_bool.shape[1]
    L = seq - nq
    n_layers = stacked_weights[0].shape[0]

    # TODO(synk): for production shapes, pad seq/L up to (8, 128)-tile multiples
    # (masking padded keys) and keep d a multiple of 128 so hd >= 64.
    y = jnp.transpose(y_sbd, (1, 0, 2)).astype(jnp.float32)          # (bs, seq, d)

    # additive mask, only the (nq, L) mask-query rows, shipped as bf16; the
    # all-zero rows for the L clip queries are synthesized in-kernel.
    amask = jnp.where(attn_mask_bool, jnp.float32(_NEG_INF),
                      jnp.float32(0.0)).astype(jnp.bfloat16)          # (bs, nq, L)

    total_w_bytes = sum(int(w.size) * w.dtype.itemsize for w in stacked_weights)
    per_layer_w_bytes = total_w_bytes // max(n_layers, 1)
    vmem_limit = _vmem_limit_bytes()
    tile_b = _pick_tile_b(bs, seq, nq, L, d, heads, per_layer_w_bytes, vmem_limit)
    n_btiles = bs // tile_b

    def w_spec(w):
        zeros = (0,) * (w.ndim - 1)
        return pl.BlockSpec((None,) + w.shape[1:],
                            lambda b, l, _z=zeros: (l,) + _z)

    kernel = functools.partial(resblock_kernel, nq, heads)

    grid_spec = pltpu.PrefetchScalarGridSpec(
        num_scalar_prefetch=0,
        grid=(n_btiles, n_layers),
        in_specs=[
            pl.BlockSpec((tile_b, seq, d), lambda b, l: (b, 0, 0)),   # activations
            pl.BlockSpec((tile_b, nq, L), lambda b, l: (b, 0, 0)),    # mask (nq rows)
        ] + [w_spec(w) for w in stacked_weights],
        out_specs=pl.BlockSpec((tile_b, seq, d), lambda b, l: (b, 0, 0)),
    )

    # advisory cost so XLA schedules surrounding ops around the long custom call
    flops = 2 * bs * n_layers * (L * d * 3 * d + nq * d * d + 2 * seq * L * d
                                 + seq * d * d + 2 * seq * d * 4 * d)
    transcendentals = bs * n_layers * (heads * seq * L + seq * 4 * d)
    bytes_accessed = (total_w_bytes * n_btiles
                      + 2 * int(y.size) * 4 + int(amask.size) * 2)

    # TODO(synk): on v7x (2 TCs) with small bs, 'parallel' on the batch-tile axis
    # can leave a core idle and doubles weight HBM traffic; shard a seq/heads
    # tile across cores instead for small-batch inference.
    out = pl.pallas_call(
        kernel,
        out_shape=jax.ShapeDtypeStruct((bs, seq, d), jnp.float32),
        grid_spec=grid_spec,
        compiler_params=pltpu.CompilerParams(
            dimension_semantics=("parallel", "arbitrary"),
            vmem_limit_bytes=vmem_limit,
        ),
        cost_estimate=pl.CostEstimate(
            flops=flops,
            transcendentals=transcendentals,
            bytes_accessed=bytes_accessed),
    )(y, amask, *stacked_weights)

    return jnp.transpose(out, (1, 0, 2))                              # (seq, bs, d)


# --------------------------- pure-JAX reference ----------------------------- #
def _reference_block(y, mask_f, p, nq, heads):
    d = y.shape[-1]
    hd = d // heads
    scale = 1.0 / math.sqrt(hd)

    def ln(x, w, b, eps=1e-5):
        mean = jnp.mean(x, -1, keepdims=True)
        var = jnp.mean((x - mean) ** 2, -1, keepdims=True)
        return (x - mean) / jnp.sqrt(var + eps) * w + b

    def one(yb, mb):
        x1 = ln(yb, p['ln1_w'], p['ln1_b'])
        qkv = x1[nq:] @ p['in_w'].T + p['in_b']
        q, k, v = qkv[:, :d], qkv[:, d:2 * d], qkv[:, 2 * d:]
        new_q = x1[:nq] @ p['nq_w'].T + p['nq_b']

        def heads_attn(qm, add_mask):
            outs = []
            for h in range(heads):
                sl = slice(h * hd, (h + 1) * hd)
                att = (qm[:, sl] * scale) @ k[:, sl].T
                if add_mask is not None:
                    att = att + add_mask
                outs.append(jax.nn.softmax(att, axis=-1) @ v[:, sl])
            return jnp.concatenate(outs, axis=-1)

        clip_out = heads_attn(q, None)
        mask_out = heads_attn(new_q, mb)
        attn_out = jnp.concatenate([mask_out, clip_out], 0) @ p['out_w'].T + p['out_b']
        y1 = yb + attn_out
        h1 = ln(y1, p['ln2_w'], p['ln2_b']) @ p['fc_w'].T + p['fc_b']
        h1 = h1 * jax.nn.sigmoid(1.702 * h1)
        return y1 + h1 @ p['pj_w'].T + p['pj_b']

    return jax.vmap(one)(y, mask_f)


def transformer_reference(y_sbd, attn_mask_bool, layer_params, heads):
    y = jnp.transpose(y_sbd, (1, 0, 2)).astype(jnp.float32)
    nq = attn_mask_bool.shape[1]
    mask_f = jnp.where(attn_mask_bool, jnp.float32(_NEG_INF), jnp.float32(0.0))
    for p in layer_params:
        y = _reference_block(y, mask_f, p, nq, heads)
    return jnp.transpose(y, (1, 0, 2))


# ------------------------------- param init --------------------------------- #
def init_layer_params(key, d):
    ks = jax.random.split(key, 12)
    n = lambda k, shp, s=0.05: (jax.random.normal(k, shp) * s).astype(jnp.float32)
    return {
        'ln1_w': jnp.ones((d,), jnp.float32),  'ln1_b': jnp.zeros((d,), jnp.float32),
        'in_w':  n(ks[0], (3 * d, d)),         'in_b':  n(ks[1], (3 * d,), 0.02),
        'nq_w':  n(ks[2], (d, d)),             'nq_b':  n(ks[3], (d,), 0.02),
        'out_w': n(ks[4], (d, d)),             'out_b': n(ks[5], (d,), 0.02),
        'ln2_w': jnp.ones((d,), jnp.float32),  'ln2_b': jnp.zeros((d,), jnp.float32),
        'fc_w':  n(ks[6], (4 * d, d)),         'fc_b':  n(ks[7], (4 * d,), 0.02),
        'pj_w':  n(ks[8], (d, 4 * d)),         'pj_b':  n(ks[9], (d,), 0.02),
    }


# ----------------------------------- main ----------------------------------- #
if __name__ == "__main__":
    width, layers, heads, patch_size = 32, 2, 4, 16   # patch_size unused in forward
    nq, L, bs = 8, 8, 2
    seq = nq + L

    key = jax.random.PRNGKey(0)
    k_y, k_m, k_p = jax.random.split(key, 3)

    # PyTorch-layout inputs: y is (seq, bs, width), attn_mask is (bs, nq, L) bool.
    y = jax.random.normal(k_y, (seq, bs, width), dtype=jnp.float32)
    attn_mask = jax.random.bernoulli(k_m, 0.25, (bs, nq, L))

    layer_keys = jax.random.split(k_p, layers)
    layer_params = [init_layer_params(layer_keys[i], width) for i in range(layers)]

    # one-time weight preparation, hoisted out of the forward pass
    stacked = prepare_transformer_weights(layer_params)

    out = transformer_pallas(y, attn_mask, stacked, heads)
    out = jax.block_until_ready(out)

    ref = transformer_reference(y, attn_mask, layer_params, heads)
    ref = jax.block_until_ready(ref)

    assert out.shape == (seq, bs, width)
    # Kernel runs MXU matmuls in bf16 with f32 accumulation, reference is pure
    # f32 -> mixed-precision tolerance.
    max_err = jnp.max(jnp.abs(out - ref))
    assert jnp.allclose(out, ref, rtol=2e-2, atol=2e-2), f"max abs err {max_err}"

    print("KERNEL_OK")
</pallas_src>

<mosaic_0001>
module attributes {stable_mosaic.version = 11 : i64} {
  func.func @resblock_kernel(%arg0: i32, %arg1: i32, %arg2: memref<2x16x32xf32, #tpu.memory_space<vmem>>, %arg3: memref<2x8x8xbf16, #tpu.memory_space<vmem>>, %arg4: memref<1x1x32xf32, #tpu.memory_space<vmem>>, %arg5: memref<1x1x32xf32, #tpu.memory_space<vmem>>, %arg6: memref<1x32x96xbf16, #tpu.memory_space<vmem>>, %arg7: memref<1x1x96xf32, #tpu.memory_space<vmem>>, %arg8: memref<1x32x32xbf16, #tpu.memory_space<vmem>>, %arg9: memref<1x1x32xf32, #tpu.memory_space<vmem>>, %arg10: memref<1x32x32xbf16, #tpu.memory_space<vmem>>, %arg11: memref<1x1x32xf32, #tpu.memory_space<vmem>>, %arg12: memref<1x1x32xf32, #tpu.memory_space<vmem>>, %arg13: memref<1x1x32xf32, #tpu.memory_space<vmem>>, %arg14: memref<1x32x128xbf16, #tpu.memory_space<vmem>>, %arg15: memref<1x1x128xf32, #tpu.memory_space<vmem>>, %arg16: memref<1x128x32xbf16, #tpu.memory_space<vmem>>, %arg17: memref<1x1x32xf32, #tpu.memory_space<vmem>>, %arg18: memref<2x16x32xf32, #tpu.memory_space<vmem>>) attributes {dimension_semantics = [#tpu.dimension_semantics<parallel>, #tpu.dimension_semantics<arbitrary>], iteration_bounds = array<i64: 1, 2>, scalar_prefetch = 0 : i64, scratch_operands = 0 : i64, tpu.core_type = #tpu.core_type<tc>, window_params = [{transform_indices = @transform_0, window_bounds = array<i64: 2, 16, 32>}, {transform_indices = @transform_1, window_bounds = array<i64: 2, 8, 8>}, {transform_indices = @transform_2, window_bounds = array<i64: 1, 1, 32>}, {transform_indices = @transform_3, window_bounds = array<i64: 1, 1, 32>}, {transform_indices = @transform_4, window_bounds = array<i64: 1, 32, 96>}, {transform_indices = @transform_5, window_bounds = array<i64: 1, 1, 96>}, {transform_indices = @transform_6, window_bounds = array<i64: 1, 32, 32>}, {transform_indices = @transform_7, window_bounds = array<i64: 1, 1, 32>}, {transform_indices = @transform_8, window_bounds = array<i64: 1, 32, 32>}, {transform_indices = @transform_9, window_bounds = array<i64: 1, 1, 32>}, {transform_indices = @transform_10, window_bounds = array<i64: 1, 1, 32>}, {transform_indices = @transform_11, window_bounds = array<i64: 1, 1, 32>}, {transform_indices = @transform_12, window_bounds = array<i64: 1, 32, 128>}, {transform_indices = @transform_13, window_bounds = array<i64: 1, 1, 128>}, {transform_indices = @transform_14, window_bounds = array<i64: 1, 128, 32>}, {transform_indices = @transform_15, window_bounds = array<i64: 1, 1, 32>}, {transform_indices = @transform_16, window_bounds = array<i64: 2, 16, 32>}]} {
    %c0_i32 = arith.constant 0 : i32
    %0 = arith.cmpi eq, %arg1, %c0_i32 : i32
    %1 = arith.extui %0 : i1 to i32
    %c0_i32_0 = arith.constant 0 : i32
    %2 = arith.cmpi ne, %1, %c0_i32_0 : i32
    scf.if %2 {
      %c0_146 = arith.constant 0 : index
      %c0_147 = arith.constant 0 : index
      %c0_148 = arith.constant 0 : index
      %359 = vector.load %arg2[%c0_146, %c0_147, %c0_148] : memref<2x16x32xf32, #tpu.memory_space<vmem>>, vector<2x16x32xf32>
      %c0_149 = arith.constant 0 : index
      %c0_150 = arith.constant 0 : index
      %c0_151 = arith.constant 0 : index
      %360 = vector.load %arg18[%c0_149, %c0_150, %c0_151] : memref<2x16x32xf32, #tpu.memory_space<vmem>>, vector<2x16x32xf32>
      tpu.vector_store %arg18[%c0_149, %c0_150, %c0_151], %359 {strides = array<i32>} : memref<2x16x32xf32, #tpu.memory_space<vmem>>, vector<2x16x32xf32>,
    } else {
    }
    %c0 = arith.constant 0 : index
    %c0_1 = arith.constant 0 : index
    %c0_2 = arith.constant 0 : index
    %3 = vector.load %arg18[%c0, %c0_1, %c0_2] : memref<2x16x32xf32, #tpu.memory_space<vmem>>, vector<1x16x32xf32>
    %4 = vector.shape_cast %3 : vector<1x16x32xf32> to vector<16x32xf32>
    %c0_3 = arith.constant 0 : index
    %c0_4 = arith.constant 0 : index
    %c0_5 = arith.constant 0 : index
    %5 = vector.load %arg4[%c0_3, %c0_4, %c0_5] : memref<1x1x32xf32, #tpu.memory_space<vmem>>, vector<1x1x32xf32>
    %6 = vector.shape_cast %5 : vector<1x1x32xf32> to vector<1x32xf32>
    %c0_6 = arith.constant 0 : index
    %c0_7 = arith.constant 0 : index
    %c0_8 = arith.constant 0 : index
    %7 = vector.load %arg5[%c0_6, %c0_7, %c0_8] : memref<1x1x32xf32, #tpu.memory_space<vmem>>, vector<1x1x32xf32>
    %8 = vector.shape_cast %7 : vector<1x1x32xf32> to vector<1x32xf32>
    %cst = arith.constant dense<0.000000e+00> : vector<16xf32>
    %9 = vector.multi_reduction <add>, %4, %cst [1] : vector<16x32xf32> to vector<16xf32>
    %10 = vector.shape_cast %9 : vector<16xf32> to vector<16x1xf32>
    %cst_9 = arith.constant 3.200000e+01 : f32
    %11 = vector.broadcast %cst_9 : f32 to vector<16x1xf32>
    %12 = arith.divf %10, %11 : vector<16x1xf32>
    %13 = vector.broadcast %12 : vector<16x1xf32> to vector<16x32xf32>
    %14 = arith.subf %4, %13 : vector<16x32xf32>
    %15 = arith.mulf %14, %14 : vector<16x32xf32>
    %cst_10 = arith.constant dense<0.000000e+00> : vector<16xf32>
    %16 = vector.multi_reduction <add>, %15, %cst_10 [1] : vector<16x32xf32> to vector<16xf32>
    %17 = vector.shape_cast %16 : vector<16xf32> to vector<16x1xf32>
    %cst_11 = arith.constant 3.200000e+01 : f32
    %18 = vector.broadcast %cst_11 : f32 to vector<16x1xf32>
    %19 = arith.divf %17, %18 : vector<16x1xf32>
    %20 = vector.broadcast %12 : vector<16x1xf32> to vector<16x32xf32>
    %21 = arith.subf %4, %20 : vector<16x32xf32>
    %cst_12 = arith.constant 9.99999974E-6 : f32
    %22 = vector.broadcast %cst_12 : f32 to vector<16x1xf32>
    %23 = arith.addf %19, %22 : vector<16x1xf32>
    %24 = math.rsqrt %23 : vector<16x1xf32>
    %25 = vector.broadcast %24 : vector<16x1xf32> to vector<16x32xf32>
    %26 = arith.mulf %21, %25 : vector<16x32xf32>
    %27 = vector.broadcast %6 : vector<1x32xf32> to vector<16x32xf32>
    %28 = arith.mulf %26, %27 : vector<16x32xf32>
    %29 = vector.broadcast %8 : vector<1x32xf32> to vector<16x32xf32>
    %30 = arith.addf %28, %29 : vector<16x32xf32>
    %31 = vector.extract_strided_slice %30 {offsets = [8, 0], sizes = [8, 32], strides = [1, 1]} : vector<16x32xf32> to vector<8x32xf32>
    %32 = arith.truncf %31 : vector<8x32xf32> to vector<8x32xbf16>
    %33 = vector.extract_strided_slice %30 {offsets = [0, 0], sizes = [8, 32], strides = [1, 1]} : vector<16x32xf32> to vector<8x32xf32>
    %34 = arith.truncf %33 : vector<8x32xf32> to vector<8x32xbf16>
    %c0_13 = arith.constant 0 : index
    %c0_14 = arith.constant 0 : index
    %c0_15 = arith.constant 0 : index
    %35 = vector.load %arg6[%c0_13, %c0_14, %c0_15] : memref<1x32x96xbf16, #tpu.memory_space<vmem>>, vector<1x32x96xbf16>
    %36 = vector.shape_cast %35 : vector<1x32x96xbf16> to vector<32x96xbf16>
    %cst_16 = arith.constant dense<0.000000e+00> : vector<8x96xf32>
    %37 = tpu.matmul %32, %36, %cst_16 {dimension_numbers = #tpu.dot_dimension_numbers<[1], [0], [0], [1], [0, 0, 1, 1], [], []>} : vector<8x32xbf16>, vector<32x96xbf16>, vector<8x96xf32> -> vector<8x96xf32>
    %c0_17 = arith.constant 0 : index
    %c0_18 = arith.constant 0 : index
    %c0_19 = arith.constant 0 : index
    %38 = vector.load %arg7[%c0_17, %c0_18, %c0_19] : memref<1x1x96xf32, #tpu.memory_space<vmem>>, vector<1x1x96xf32>
    %39 = vector.shape_cast %38 : vector<1x1x96xf32> to vector<1x96xf32>
    %40 = vector.broadcast %39 : vector<1x96xf32> to vector<8x96xf32>
    %41 = arith.addf %37, %40 : vector<8x96xf32>
    %c0_20 = arith.constant 0 : index
    %c0_21 = arith.constant 0 : index
    %c0_22 = arith.constant 0 : index
    %42 = vector.load %arg8[%c0_20, %c0_21, %c0_22] : memref<1x32x32xbf16, #tpu.memory_space<vmem>>, vector<1x32x32xbf16>
    %43 = vector.shape_cast %42 : vector<1x32x32xbf16> to vector<32x32xbf16>
    %cst_23 = arith.constant dense<0.000000e+00> : vector<8x32xf32>
    %44 = tpu.matmul %34, %43, %cst_23 {dimension_numbers = #tpu.dot_dimension_numbers<[1], [0], [0], [1], [0, 0, 1, 1], [], []>} : vector<8x32xbf16>, vector<32x32xbf16>, vector<8x32xf32> -> vector<8x32xf32>
    %c0_24 = arith.constant 0 : index
    %c0_25 = arith.constant 0 : index
    %c0_26 = arith.constant 0 : index
    %45 = vector.load %arg9[%c0_24, %c0_25, %c0_26] : memref<1x1x32xf32, #tpu.memory_space<vmem>>, vector<1x1x32xf32>
    %46 = vector.shape_cast %45 : vector<1x1x32xf32> to vector<1x32xf32>
    %47 = vector.broadcast %46 : vector<1x32xf32> to vector<8x32xf32>
    %48 = arith.addf %44, %47 : vector<8x32xf32>
    %49 = vector.extract_strided_slice %41 {offsets = [0, 0], sizes = [8, 32], strides = [1, 1]} : vector<8x96xf32> to vector<8x32xf32>
    %50 = tpu.concatenate %48, %49 in 0 : vector<8x32xf32>, vector<8x32xf32> -> vector<16x32xf32>
    %cst_27 = arith.constant 0.353553385 : f32
    %51 = vector.broadcast %cst_27 : f32 to vector<16x32xf32>
    %52 = arith.mulf %50, %51 : vector<16x32xf32>
    %53 = vector.extract_strided_slice %41 {offsets = [0, 32], sizes = [8, 32], strides = [1, 1]} : vector<8x96xf32> to vector<8x32xf32>
    %54 = vector.extract_strided_slice %41 {offsets = [0, 64], sizes = [8, 32], strides = [1, 1]} : vector<8x96xf32> to vector<8x32xf32>
    %55 = arith.truncf %52 : vector<16x32xf32> to vector<16x32xbf16>
    %56 = vector.extract_strided_slice %55 {offsets = [0, 0], sizes = [16, 8], strides = [1, 1]} : vector<16x32xbf16> to vector<16x8xbf16>
    %57 = vector.shape_cast %56 : vector<16x8xbf16> to vector<1x16x8xbf16>
    %58 = vector.extract_strided_slice %55 {offsets = [0, 8], sizes = [16, 8], strides = [1, 1]} : vector<16x32xbf16> to vector<16x8xbf16>
    %59 = vector.shape_cast %58 : vector<16x8xbf16> to vector<1x16x8xbf16>
    %60 = vector.extract_strided_slice %55 {offsets = [0, 16], sizes = [16, 8], strides = [1, 1]} : vector<16x32xbf16> to vector<16x8xbf16>
    %61 = vector.shape_cast %60 : vector<16x8xbf16> to vector<1x16x8xbf16>
    %62 = vector.extract_strided_slice %55 {offsets = [0, 24], sizes = [16, 8], strides = [1, 1]} : vector<16x32xbf16> to vector<16x8xbf16>
    %63 = vector.shape_cast %62 : vector<16x8xbf16> to vector<1x16x8xbf16>
    %64 = tpu.concatenate %57, %59, %61, %63 in 0 : vector<1x16x8xbf16>, vector<1x16x8xbf16>, vector<1x16x8xbf16>, vector<1x16x8xbf16> -> vector<4x16x8xbf16>
    %65 = arith.truncf %53 : vector<8x32xf32> to vector<8x32xbf16>
    %66 = vector.extract_strided_slice %65 {offsets = [0, 0], sizes = [8, 8], strides = [1, 1]} : vector<8x32xbf16> to vector<8x8xbf16>
    %67 = vector.shape_cast %66 : vector<8x8xbf16> to vector<1x8x8xbf16>
    %68 = vector.extract_strided_slice %65 {offsets = [0, 8], sizes = [8, 8], strides = [1, 1]} : vector<8x32xbf16> to vector<8x8xbf16>
    %69 = vector.shape_cast %68 : vector<8x8xbf16> to vector<1x8x8xbf16>
    %70 = vector.extract_strided_slice %65 {offsets = [0, 16], sizes = [8, 8], strides = [1, 1]} : vector<8x32xbf16> to vector<8x8xbf16>
    %71 = vector.shape_cast %70 : vector<8x8xbf16> to vector<1x8x8xbf16>
    %72 = vector.extract_strided_slice %65 {offsets = [0, 24], sizes = [8, 8], strides = [1, 1]} : vector<8x32xbf16> to vector<8x8xbf16>
    %73 = vector.shape_cast %72 : vector<8x8xbf16> to vector<1x8x8xbf16>
    %74 = tpu.concatenate %67, %69, %71, %73 in 0 : vector<1x8x8xbf16>, vector<1x8x8xbf16>, vector<1x8x8xbf16>, vector<1x8x8xbf16> -> vector<4x8x8xbf16>
    %75 = arith.truncf %54 : vector<8x32xf32> to vector<8x32xbf16>
    %76 = vector.extract_strided_slice %75 {offsets = [0, 0], sizes = [8, 8], strides = [1, 1]} : vector<8x32xbf16> to vector<8x8xbf16>
    %77 = vector.shape_cast %76 : vector<8x8xbf16> to vector<1x8x8xbf16>
    %78 = vector.extract_strided_slice %75 {offsets = [0, 8], sizes = [8, 8], strides = [1, 1]} : vector<8x32xbf16> to vector<8x8xbf16>
    %79 = vector.shape_cast %78 : vector<8x8xbf16> to vector<1x8x8xbf16>
    %80 = vector.extract_strided_slice %75 {offsets = [0, 16], sizes = [8, 8], strides = [1, 1]} : vector<8x32xbf16> to vector<8x8xbf16>
    %81 = vector.shape_cast %80 : vector<8x8xbf16> to vector<1x8x8xbf16>
    %82 = vector.extract_strided_slice %75 {offsets = [0, 24], sizes = [8, 8], strides = [1, 1]} : vector<8x32xbf16> to vector<8x8xbf16>
    %83 = vector.shape_cast %82 : vector<8x8xbf16> to vector<1x8x8xbf16>
    %84 = tpu.concatenate %77, %79, %81, %83 in 0 : vector<1x8x8xbf16>, vector<1x8x8xbf16>, vector<1x8x8xbf16>, vector<1x8x8xbf16> -> vector<4x8x8xbf16>
    "tpu.trace_start"() <{level = 10 : i32, message = "hqd,hkd->hqk"}> : () -> ()
    %cst_28 = arith.constant dense<0.000000e+00> : vector<4x16x8xf32>
    %85 = tpu.matmul %64, %74, %cst_28 {dimension_numbers = #tpu.dot_dimension_numbers<[2], [2], [1], [1], [0, 0, 0, 1, 1, 1], [0], [0]>} : vector<4x16x8xbf16>, vector<4x8x8xbf16>, vector<4x16x8xf32> -> vector<4x16x8xf32>
    "tpu.trace_stop"() : () -> ()
    %c0_29 = arith.constant 0 : index
    %c0_30 = arith.constant 0 : index
    %c0_31 = arith.constant 0 : index
    %86 = vector.load %arg3[%c0_29, %c0_30, %c0_31] : memref<2x8x8xbf16, #tpu.memory_space<vmem>>, vector<1x8x8xbf16>
    %87 = vector.shape_cast %86 : vector<1x8x8xbf16> to vector<8x8xbf16>
    %88 = arith.extf %87 : vector<8x8xbf16> to vector<8x8xf32>
    %cst_32 = arith.constant 0.000000e+00 : f32
    %89 = vector.broadcast %cst_32 : f32 to vector<8x8xf32>
    %90 = tpu.concatenate %88, %89 in 0 : vector<8x8xf32>, vector<8x8xf32> -> vector<16x8xf32>
    %91 = vector.shape_cast %90 : vector<16x8xf32> to vector<1x16x8xf32>
    %92 = vector.broadcast %91 : vector<1x16x8xf32> to vector<4x16x8xf32>
    %93 = arith.addf %85, %92 : vector<4x16x8xf32>
    %cst_33 = arith.constant dense<0xFF800000> : vector<4x16xf32>
    %94 = vector.multi_reduction <maximumf>, %93, %cst_33 [2] : vector<4x16x8xf32> to vector<4x16xf32>
    %95 = vector.shape_cast %94 : vector<4x16xf32> to vector<4x16x1xf32>
    %96 = vector.broadcast %95 : vector<4x16x1xf32> to vector<4x16x8xf32>
    %97 = arith.subf %93, %96 : vector<4x16x8xf32>
    %98 = math.exp %97 : vector<4x16x8xf32>
    %cst_34 = arith.constant dense<0.000000e+00> : vector<4x16xf32>
    %99 = vector.multi_reduction <add>, %98, %cst_34 [2] : vector<4x16x8xf32> to vector<4x16xf32>
    %100 = vector.shape_cast %99 : vector<4x16xf32> to vector<4x16x1xf32>
    %101 = tpu.reciprocal %100 {approx = true} : vector<4x16x1xf32> -> vector<4x16x1xf32>
    %102 = vector.broadcast %101 : vector<4x16x1xf32> to vector<4x16x8xf32>
    %103 = arith.mulf %98, %102 : vector<4x16x8xf32>
    %104 = arith.truncf %103 : vector<4x16x8xf32> to vector<4x16x8xbf16>
    "tpu.trace_start"() <{level = 10 : i32, message = "hqk,hkd->hqd"}> : () -> ()
    %cst_35 = arith.constant dense<0.000000e+00> : vector<4x16x8xf32>
    %105 = tpu.matmul %104, %84, %cst_35 {dimension_numbers = #tpu.dot_dimension_numbers<[2], [1], [1], [2], [0, 0, 0, 1, 1, 2], [0], [0]>} : vector<4x16x8xbf16>, vector<4x8x8xbf16>, vector<4x16x8xf32> -> vector<4x16x8xf32>
    "tpu.trace_stop"() : () -> ()
    %106 = vector.extract_strided_slice %105 {offsets = [0, 0, 0], sizes = [1, 16, 8], strides = [1, 1, 1]} : vector<4x16x8xf32> to vector<1x16x8xf32>
    %107 = vector.shape_cast %106 : vector<1x16x8xf32> to vector<16x8xf32>
    %108 = arith.truncf %107 : vector<16x8xf32> to vector<16x8xbf16>
    %109 = vector.extract_strided_slice %105 {offsets = [1, 0, 0], sizes = [1, 16, 8], strides = [1, 1, 1]} : vector<4x16x8xf32> to vector<1x16x8xf32>
    %110 = vector.shape_cast %109 : vector<1x16x8xf32> to vector<16x8xf32>
    %111 = arith.truncf %110 : vector<16x8xf32> to vector<16x8xbf16>
    %112 = vector.extract_strided_slice %105 {offsets = [2, 0, 0], sizes = [1, 16, 8], strides = [1, 1, 1]} : vector<4x16x8xf32> to vector<1x16x8xf32>
    %113 = vector.shape_cast %112 : vector<1x16x8xf32> to vector<16x8xf32>
    %114 = arith.truncf %113 : vector<16x8xf32> to vector<16x8xbf16>
    %115 = vector.extract_strided_slice %105 {offsets = [3, 0, 0], sizes = [1, 16, 8], strides = [1, 1, 1]} : vector<4x16x8xf32> to vector<1x16x8xf32>
    %116 = vector.shape_cast %115 : vector<1x16x8xf32> to vector<16x8xf32>
    %117 = arith.truncf %116 : vector<16x8xf32> to vector<16x8xbf16>
    %118 = tpu.concatenate %108, %111, %114, %117 in 1 : vector<16x8xbf16>, vector<16x8xbf16>, vector<16x8xbf16>, vector<16x8xbf16> -> vector<16x32xbf16>
    %c0_36 = arith.constant 0 : index
    %c0_37 = arith.constant 0 : index
    %c0_38 = arith.constant 0 : index
    %119 = vector.load %arg10[%c0_36, %c0_37, %c0_38] : memref<1x32x32xbf16, #tpu.memory_space<vmem>>, vector<1x32x32xbf16>
    %120 = vector.shape_cast %119 : vector<1x32x32xbf16> to vector<32x32xbf16>
    %cst_39 = arith.constant dense<0.000000e+00> : vector<16x32xf32>
    %121 = tpu.matmul %118, %120, %cst_39 {dimension_numbers = #tpu.dot_dimension_numbers<[1], [0], [0], [1], [0, 0, 1, 1], [], []>} : vector<16x32xbf16>, vector<32x32xbf16>, vector<16x32xf32> -> vector<16x32xf32>
    %c0_40 = arith.constant 0 : index
    %c0_41 = arith.constant 0 : index
    %c0_42 = arith.constant 0 : index
    %122 = vector.load %arg11[%c0_40, %c0_41, %c0_42] : memref<1x1x32xf32, #tpu.memory_space<vmem>>, vector<1x1x32xf32>
    %123 = vector.shape_cast %122 : vector<1x1x32xf32> to vector<1x32xf32>
    %124 = vector.broadcast %123 : vector<1x32xf32> to vector<16x32xf32>
    %125 = arith.addf %121, %124 : vector<16x32xf32>
    %126 = arith.addf %4, %125 : vector<16x32xf32>
    %c0_43 = arith.constant 0 : index
    %c0_44 = arith.constant 0 : index
    %c0_45 = arith.constant 0 : index
    %127 = vector.load %arg12[%c0_43, %c0_44, %c0_45] : memref<1x1x32xf32, #tpu.memory_space<vmem>>, vector<1x1x32xf32>
    %128 = vector.shape_cast %127 : vector<1x1x32xf32> to vector<1x32xf32>
    %c0_46 = arith.constant 0 : index
    %c0_47 = arith.constant 0 : index
    %c0_48 = arith.constant 0 : index
    %129 = vector.load %arg13[%c0_46, %c0_47, %c0_48] : memref<1x1x32xf32, #tpu.memory_space<vmem>>, vector<1x1x32xf32>
    %130 = vector.shape_cast %129 : vector<1x1x32xf32> to vector<1x32xf32>
    %cst_49 = arith.constant dense<0.000000e+00> : vector<16xf32>
    %131 = vector.multi_reduction <add>, %126, %cst_49 [1] : vector<16x32xf32> to vector<16xf32>
    %132 = vector.shape_cast %131 : vector<16xf32> to vector<16x1xf32>
    %cst_50 = arith.constant 3.200000e+01 : f32
    %133 = vector.broadcast %cst_50 : f32 to vector<16x1xf32>
    %134 = arith.divf %132, %133 : vector<16x1xf32>
    %135 = vector.broadcast %134 : vector<16x1xf32> to vector<16x32xf32>
    %136 = arith.subf %126, %135 : vector<16x32xf32>
    %137 = arith.mulf %136, %136 : vector<16x32xf32>
    %cst_51 = arith.constant dense<0.000000e+00> : vector<16xf32>
    %138 = vector.multi_reduction <add>, %137, %cst_51 [1] : vector<16x32xf32> to vector<16xf32>
    %139 = vector.shape_cast %138 : vector<16xf32> to vector<16x1xf32>
    %cst_52 = arith.constant 3.200000e+01 : f32
    %140 = vector.broadcast %cst_52 : f32 to vector<16x1xf32>
    %141 = arith.divf %139, %140 : vector<16x1xf32>
    %142 = vector.broadcast %134 : vector<16x1xf32> to vector<16x32xf32>
    %143 = arith.subf %126, %142 : vector<16x32xf32>
    %cst_53 = arith.constant 9.99999974E-6 : f32
    %144 = vector.broadcast %cst_53 : f32 to vector<16x1xf32>
    %145 = arith.addf %141, %144 : vector<16x1xf32>
    %146 = math.rsqrt %145 : vector<16x1xf32>
    %147 = vector.broadcast %146 : vector<16x1xf32> to vector<16x32xf32>
    %148 = arith.mulf %143, %147 : vector<16x32xf32>
    %149 = vector.broadcast %128 : vector<1x32xf32> to vector<16x32xf32>
    %150 = arith.mulf %148, %149 : vector<16x32xf32>
    %151 = vector.broadcast %130 : vector<1x32xf32> to vector<16x32xf32>
    %152 = arith.addf %150, %151 : vector<16x32xf32>
    %153 = arith.truncf %152 : vector<16x32xf32> to vector<16x32xbf16>
    %c0_54 = arith.constant 0 : index
    %c0_55 = arith.constant 0 : index
    %c0_56 = arith.constant 0 : index
    %154 = vector.load %arg14[%c0_54, %c0_55, %c0_56] : memref<1x32x128xbf16, #tpu.memory_space<vmem>>, vector<1x32x128xbf16>
    %155 = vector.shape_cast %154 : vector<1x32x128xbf16> to vector<32x128xbf16>
    %cst_57 = arith.constant dense<0.000000e+00> : vector<16x128xf32>
    %156 = tpu.matmul %153, %155, %cst_57 {dimension_numbers = #tpu.dot_dimension_numbers<[1], [0], [0], [1], [0, 0, 1, 1], [], []>} : vector<16x32xbf16>, vector<32x128xbf16>, vector<16x128xf32> -> vector<16x128xf32>
    %c0_58 = arith.constant 0 : index
    %c0_59 = arith.constant 0 : index
    %c0_60 = arith.constant 0 : index
    %157 = vector.load %arg15[%c0_58, %c0_59, %c0_60] : memref<1x1x128xf32, #tpu.memory_space<vmem>>, vector<1x1x128xf32>
    %158 = vector.shape_cast %157 : vector<1x1x128xf32> to vector<1x128xf32>
    %159 = vector.broadcast %158 : vector<1x128xf32> to vector<16x128xf32>
    %160 = arith.addf %156, %159 : vector<16x128xf32>
    %cst_61 = arith.constant 1.702000e+00 : f32
    %161 = vector.broadcast %cst_61 : f32 to vector<16x128xf32>
    %162 = arith.mulf %161, %160 : vector<16x128xf32>
    %163 = arith.negf %162 : vector<16x128xf32>
    %164 = math.exp %163 : vector<16x128xf32>
    %cst_62 = arith.constant 1.000000e+00 : f32
    %165 = vector.broadcast %cst_62 : f32 to vector<16x128xf32>
    %166 = arith.addf %165, %164 : vector<16x128xf32>
    %167 = arith.divf %165, %166 : vector<16x128xf32>
    %168 = arith.mulf %160, %167 : vector<16x128xf32>
    %169 = arith.truncf %168 : vector<16x128xf32> to vector<16x128xbf16>
    %c0_63 = arith.constant 0 : index
    %c0_64 = arith.constant 0 : index
    %c0_65 = arith.constant 0 : index
    %170 = vector.load %arg16[%c0_63, %c0_64, %c0_65] : memref<1x128x32xbf16, #tpu.memory_space<vmem>>, vector<1x128x32xbf16>
    %171 = vector.shape_cast %170 : vector<1x128x32xbf16> to vector<128x32xbf16>
    %cst_66 = arith.constant dense<0.000000e+00> : vector<16x32xf32>
    %172 = tpu.matmul %169, %171, %cst_66 {dimension_numbers = #tpu.dot_dimension_numbers<[1], [0], [0], [1], [0, 0, 1, 1], [], []>} : vector<16x128xbf16>, vector<128x32xbf16>, vector<16x32xf32> -> vector<16x32xf32>
    %c0_67 = arith.constant 0 : index
    %c0_68 = arith.constant 0 : index
    %c0_69 = arith.constant 0 : index
    %173 = vector.load %arg17[%c0_67, %c0_68, %c0_69] : memref<1x1x32xf32, #tpu.memory_space<vmem>>, vector<1x1x32xf32>
    %174 = vector.shape_cast %173 : vector<1x1x32xf32> to vector<1x32xf32>
    %175 = vector.broadcast %174 : vector<1x32xf32> to vector<16x32xf32>
    %176 = arith.addf %172, %175 : vector<16x32xf32>
    %177 = arith.addf %126, %176 : vector<16x32xf32>
    %c0_70 = arith.constant 0 : index
    %c0_71 = arith.constant 0 : index
    %c0_72 = arith.constant 0 : index
    %178 = vector.load %arg18[%c0_70, %c0_71, %c0_72] : memref<2x16x32xf32, #tpu.memory_space<vmem>>, vector<1x16x32xf32>
    %179 = vector.shape_cast %178 : vector<1x16x32xf32> to vector<16x32xf32>
    %180 = vector.shape_cast %177 : vector<16x32xf32> to vector<1x16x32xf32>
    tpu.vector_store %arg18[%c0_70, %c0_71, %c0_72], %180 {strides = array<i32>} : memref<2x16x32xf32, #tpu.memory_space<vmem>>, vector<1x16x32xf32>,
    %c1 = arith.constant 1 : index
    %c0_73 = arith.constant 0 : index
    %c0_74 = arith.constant 0 : index
    %181 = vector.load %arg18[%c1, %c0_73, %c0_74] : memref<2x16x32xf32, #tpu.memory_space<vmem>>, vector<1x16x32xf32>
    %182 = vector.shape_cast %181 : vector<1x16x32xf32> to vector<16x32xf32>
    %c0_75 = arith.constant 0 : index
    %c0_76 = arith.constant 0 : index
    %c0_77 = arith.constant 0 : index
    %183 = vector.load %arg4[%c0_75, %c0_76, %c0_77] : memref<1x1x32xf32, #tpu.memory_space<vmem>>, vector<1x1x32xf32>
    %184 = vector.shape_cast %183 : vector<1x1x32xf32> to vector<1x32xf32>
    %c0_78 = arith.constant 0 : index
    %c0_79 = arith.constant 0 : index
    %c0_80 = arith.constant 0 : index
    %185 = vector.load %arg5[%c0_78, %c0_79, %c0_80] : memref<1x1x32xf32, #tpu.memory_space<vmem>>, vector<1x1x32xf32>
    %186 = vector.shape_cast %185 : vector<1x1x32xf32> to vector<1x32xf32>
    %cst_81 = arith.constant dense<0.000000e+00> : vector<16xf32>
    %187 = vector.multi_reduction <add>, %182, %cst_81 [1] : vector<16x32xf32> to vector<16xf32>
    %188 = vector.shape_cast %187 : vector<16xf32> to vector<16x1xf32>
    %cst_82 = arith.constant 3.200000e+01 : f32
    %189 = vector.broadcast %cst_82 : f32 to vector<16x1xf32>
    %190 = arith.divf %188, %189 : vector<16x1xf32>
    %191 = vector.broadcast %190 : vector<16x1xf32> to vector<16x32xf32>
    %192 = arith.subf %182, %191 : vector<16x32xf32>
    %193 = arith.mulf %192, %192 : vector<16x32xf32>
    %cst_83 = arith.constant dense<0.000000e+00> : vector<16xf32>
    %194 = vector.multi_reduction <add>, %193, %cst_83 [1] : vector<16x32xf32> to vector<16xf32>
    %195 = vector.shape_cast %194 : vector<16xf32> to vector<16x1xf32>
    %cst_84 = arith.constant 3.200000e+01 : f32
    %196 = vector.broadcast %cst_84 : f32 to vector<16x1xf32>
    %197 = arith.divf %195, %196 : vector<16x1xf32>
    %198 = vector.broadcast %190 : vector<16x1xf32> to vector<16x32xf32>
    %199 = arith.subf %182, %198 : vector<16x32xf32>
    %cst_85 = arith.constant 9.99999974E-6 : f32
    %200 = vector.broadcast %cst_85 : f32 to vector<16x1xf32>
    %201 = arith.addf %197, %200 : vector<16x1xf32>
    %202 = math.rsqrt %201 : vector<16x1xf32>
    %203 = vector.broadcast %202 : vector<16x1xf32> to vector<16x32xf32>
    %204 = arith.mulf %199, %203 : vector<16x32xf32>
    %205 = vector.broadcast %184 : vector<1x32xf32> to vector<16x32xf32>
    %206 = arith.mulf %204, %205 : vector<16x32xf32>
    %207 = vector.broadcast %186 : vector<1x32xf32> to vector<16x32xf32>
    %208 = arith.addf %206, %207 : vector<16x32xf32>
    %209 = vector.extract_strided_slice %208 {offsets = [8, 0], sizes = [8, 32], strides = [1, 1]} : vector<16x32xf32> to vector<8x32xf32>
    %210 = arith.truncf %209 : vector<8x32xf32> to vector<8x32xbf16>
    %211 = vector.extract_strided_slice %208 {offsets = [0, 0], sizes = [8, 32], strides = [1, 1]} : vector<16x32xf32> to vector<8x32xf32>
    %212 = arith.truncf %211 : vector<8x32xf32> to vector<8x32xbf16>
    %c0_86 = arith.constant 0 : index
    %c0_87 = arith.constant 0 : index
    %c0_88 = arith.constant 0 : index
    %213 = vector.load %arg6[%c0_86, %c0_87, %c0_88] : memref<1x32x96xbf16, #tpu.memory_space<vmem>>, vector<1x32x96xbf16>
    %214 = vector.shape_cast %213 : vector<1x32x96xbf16> to vector<32x96xbf16>
    %cst_89 = arith.constant dense<0.000000e+00> : vector<8x96xf32>
    %215 = tpu.matmul %210, %214, %cst_89 {dimension_numbers = #tpu.dot_dimension_numbers<[1], [0], [0], [1], [0, 0, 1, 1], [], []>} : vector<8x32xbf16>, vector<32x96xbf16>, vector<8x96xf32> -> vector<8x96xf32>
    %c0_90 = arith.constant 0 : index
    %c0_91 = arith.constant 0 : index
    %c0_92 = arith.constant 0 : index
    %216 = vector.load %arg7[%c0_90, %c0_91, %c0_92] : memref<1x1x96xf32, #tpu.memory_space<vmem>>, vector<1x1x96xf32>
    %217 = vector.shape_cast %216 : vector<1x1x96xf32> to vector<1x96xf32>
    %218 = vector.broadcast %217 : vector<1x96xf32> to vector<8x96xf32>
    %219 = arith.addf %215, %218 : vector<8x96xf32>
    %c0_93 = arith.constant 0 : index
    %c0_94 = arith.constant 0 : index
    %c0_95 = arith.constant 0 : index
    %220 = vector.load %arg8[%c0_93, %c0_94, %c0_95] : memref<1x32x32xbf16, #tpu.memory_space<vmem>>, vector<1x32x32xbf16>
    %221 = vector.shape_cast %220 : vector<1x32x32xbf16> to vector<32x32xbf16>
    %cst_96 = arith.constant dense<0.000000e+00> : vector<8x32xf32>
    %222 = tpu.matmul %212, %221, %cst_96 {dimension_numbers = #tpu.dot_dimension_numbers<[1], [0], [0], [1], [0, 0, 1, 1], [], []>} : vector<8x32xbf16>, vector<32x32xbf16>, vector<8x32xf32> -> vector<8x32xf32>
    %c0_97 = arith.constant 0 : index
    %c0_98 = arith.constant 0 : index
    %c0_99 = arith.constant 0 : index
    %223 = vector.load %arg9[%c0_97, %c0_98, %c0_99] : memref<1x1x32xf32, #tpu.memory_space<vmem>>, vector<1x1x32xf32>
    %224 = vector.shape_cast %223 : vector<1x1x32xf32> to vector<1x32xf32>
    %225 = vector.broadcast %224 : vector<1x32xf32> to vector<8x32xf32>
    %226 = arith.addf %222, %225 : vector<8x32xf32>
    %227 = vector.extract_strided_slice %219 {offsets = [0, 0], sizes = [8, 32], strides = [1, 1]} : vector<8x96xf32> to vector<8x32xf32>
    %228 = tpu.concatenate %226, %227 in 0 : vector<8x32xf32>, vector<8x32xf32> -> vector<16x32xf32>
    %cst_100 = arith.constant 0.353553385 : f32
    %229 = vector.broadcast %cst_100 : f32 to vector<16x32xf32>
    %230 = arith.mulf %228, %229 : vector<16x32xf32>
    %231 = vector.extract_strided_slice %219 {offsets = [0, 32], sizes = [8, 32], strides = [1, 1]} : vector<8x96xf32> to vector<8x32xf32>
    %232 = vector.extract_strided_slice %219 {offsets = [0, 64], sizes = [8, 32], strides = [1, 1]} : vector<8x96xf32> to vector<8x32xf32>
    %233 = arith.truncf %230 : vector<16x32xf32> to vector<16x32xbf16>
    %234 = vector.extract_strided_slice %233 {offsets = [0, 0], sizes = [16, 8], strides = [1, 1]} : vector<16x32xbf16> to vector<16x8xbf16>
    %235 = vector.shape_cast %234 : vector<16x8xbf16> to vector<1x16x8xbf16>
    %236 = vector.extract_strided_slice %233 {offsets = [0, 8], sizes = [16, 8], strides = [1, 1]} : vector<16x32xbf16> to vector<16x8xbf16>
    %237 = vector.shape_cast %236 : vector<16x8xbf16> to vector<1x16x8xbf16>
    %238 = vector.extract_strided_slice %233 {offsets = [0, 16], sizes = [16, 8], strides = [1, 1]} : vector<16x32xbf16> to vector<16x8xbf16>
    %239 = vector.shape_cast %238 : vector<16x8xbf16> to vector<1x16x8xbf16>
    %240 = vector.extract_strided_slice %233 {offsets = [0, 24], sizes = [16, 8], strides = [1, 1]} : vector<16x32xbf16> to vector<16x8xbf16>
    %241 = vector.shape_cast %240 : vector<16x8xbf16> to vector<1x16x8xbf16>
    %242 = tpu.concatenate %235, %237, %239, %241 in 0 : vector<1x16x8xbf16>, vector<1x16x8xbf16>, vector<1x16x8xbf16>, vector<1x16x8xbf16> -> vector<4x16x8xbf16>
    %243 = arith.truncf %231 : vector<8x32xf32> to vector<8x32xbf16>
    %244 = vector.extract_strided_slice %243 {offsets = [0, 0], sizes = [8, 8], strides = [1, 1]} : vector<8x32xbf16> to vector<8x8xbf16>
    %245 = vector.shape_cast %244 : vector<8x8xbf16> to vector<1x8x8xbf16>
    %246 = vector.extract_strided_slice %243 {offsets = [0, 8], sizes = [8, 8], strides = [1, 1]} : vector<8x32xbf16> to vector<8x8xbf16>
    %247 = vector.shape_cast %246 : vector<8x8xbf16> to vector<1x8x8xbf16>
    %248 = vector.extract_strided_slice %243 {offsets = [0, 16], sizes = [8, 8], strides = [1, 1]} : vector<8x32xbf16> to vector<8x8xbf16>
    %249 = vector.shape_cast %248 : vector<8x8xbf16> to vector<1x8x8xbf16>
    %250 = vector.extract_strided_slice %243 {offsets = [0, 24], sizes = [8, 8], strides = [1, 1]} : vector<8x32xbf16> to vector<8x8xbf16>
    %251 = vector.shape_cast %250 : vector<8x8xbf16> to vector<1x8x8xbf16>
    %252 = tpu.concatenate %245, %247, %249, %251 in 0 : vector<1x8x8xbf16>, vector<1x8x8xbf16>, vector<1x8x8xbf16>, vector<1x8x8xbf16> -> vector<4x8x8xbf16>
    %253 = arith.truncf %232 : vector<8x32xf32> to vector<8x32xbf16>
    %254 = vector.extract_strided_slice %253 {offsets = [0, 0], sizes = [8, 8], strides = [1, 1]} : vector<8x32xbf16> to vector<8x8xbf16>
    %255 = vector.shape_cast %254 : vector<8x8xbf16> to vector<1x8x8xbf16>
    %256 = vector.extract_strided_slice %253 {offsets = [0, 8], sizes = [8, 8], strides = [1, 1]} : vector<8x32xbf16> to vector<8x8xbf16>
    %257 = vector.shape_cast %256 : vector<8x8xbf16> to vector<1x8x8xbf16>
    %258 = vector.extract_strided_slice %253 {offsets = [0, 16], sizes = [8, 8], strides = [1, 1]} : vector<8x32xbf16> to vector<8x8xbf16>
    %259 = vector.shape_cast %258 : vector<8x8xbf16> to vector<1x8x8xbf16>
    %260 = vector.extract_strided_slice %253 {offsets = [0, 24], sizes = [8, 8], strides = [1, 1]} : vector<8x32xbf16> to vector<8x8xbf16>
    %261 = vector.shape_cast %260 : vector<8x8xbf16> to vector<1x8x8xbf16>
    %262 = tpu.concatenate %255, %257, %259, %261 in 0 : vector<1x8x8xbf16>, vector<1x8x8xbf16>, vector<1x8x8xbf16>, vector<1x8x8xbf16> -> vector<4x8x8xbf16>
    "tpu.trace_start"() <{level = 10 : i32, message = "hqd,hkd->hqk"}> : () -> ()
    %cst_101 = arith.constant dense<0.000000e+00> : vector<4x16x8xf32>
    %263 = tpu.matmul %242, %252, %cst_101 {dimension_numbers = #tpu.dot_dimension_numbers<[2], [2], [1], [1], [0, 0, 0, 1, 1, 1], [0], [0]>} : vector<4x16x8xbf16>, vector<4x8x8xbf16>, vector<4x16x8xf32> -> vector<4x16x8xf32>
    "tpu.trace_stop"() : () -> ()
    %c1_102 = arith.constant 1 : index
    %c0_103 = arith.constant 0 : index
    %c0_104 = arith.constant 0 : index
    %264 = vector.load %arg3[%c1_102, %c0_103, %c0_104] : memref<2x8x8xbf16, #tpu.memory_space<vmem>>, vector<1x8x8xbf16>
    %265 = vector.shape_cast %264 : vector<1x8x8xbf16> to vector<8x8xbf16>
    %266 = arith.extf %265 : vector<8x8xbf16> to vector<8x8xf32>
    %cst_105 = arith.constant 0.000000e+00 : f32
    %267 = vector.broadcast %cst_105 : f32 to vector<8x8xf32>
    %268 = tpu.concatenate %266, %267 in 0 : vector<8x8xf32>, vector<8x8xf32> -> vector<16x8xf32>
    %269 = vector.shape_cast %268 : vector<16x8xf32> to vector<1x16x8xf32>
    %270 = vector.broadcast %269 : vector<1x16x8xf32> to vector<4x16x8xf32>
    %271 = arith.addf %263, %270 : vector<4x16x8xf32>
    %cst_106 = arith.constant dense<0xFF800000> : vector<4x16xf32>
    %272 = vector.multi_reduction <maximumf>, %271, %cst_106 [2] : vector<4x16x8xf32> to vector<4x16xf32>
    %273 = vector.shape_cast %272 : vector<4x16xf32> to vector<4x16x1xf32>
    %274 = vector.broadcast %273 : vector<4x16x1xf32> to vector<4x16x8xf32>
    %275 = arith.subf %271, %274 : vector<4x16x8xf32>
    %276 = math.exp %275 : vector<4x16x8xf32>
    %cst_107 = arith.constant dense<0.000000e+00> : vector<4x16xf32>
    %277 = vector.multi_reduction <add>, %276, %cst_107 [2] : vector<4x16x8xf32> to vector<4x16xf32>
    %278 = vector.shape_cast %277 : vector<4x16xf32> to vector<4x16x1xf32>
    %279 = tpu.reciprocal %278 {approx = true} : vector<4x16x1xf32> -> vector<4x16x1xf32>
    %280 = vector.broadcast %279 : vector<4x16x1xf32> to vector<4x16x8xf32>
    %281 = arith.mulf %276, %280 : vector<4x16x8xf32>
    %282 = arith.truncf %281 : vector<4x16x8xf32> to vector<4x16x8xbf16>
    "tpu.trace_start"() <{level = 10 : i32, message = "hqk,hkd->hqd"}> : () -> ()
    %cst_108 = arith.constant dense<0.000000e+00> : vector<4x16x8xf32>
    %283 = tpu.matmul %282, %262, %cst_108 {dimension_numbers = #tpu.dot_dimension_numbers<[2], [1], [1], [2], [0, 0, 0, 1, 1, 2], [0], [0]>} : vector<4x16x8xbf16>, vector<4x8x8xbf16>, vector<4x16x8xf32> -> vector<4x16x8xf32>
    "tpu.trace_stop"() : () -> ()
    %284 = vector.extract_strided_slice %283 {offsets = [0, 0, 0], sizes = [1, 16, 8], strides = [1, 1, 1]} : vector<4x16x8xf32> to vector<1x16x8xf32>
    %285 = vector.shape_cast %284 : vector<1x16x8xf32> to vector<16x8xf32>
    %286 = arith.truncf %285 : vector<16x8xf32> to vector<16x8xbf16>
    %287 = vector.extract_strided_slice %283 {offsets = [1, 0, 0], sizes = [1, 16, 8], strides = [1, 1, 1]} : vector<4x16x8xf32> to vector<1x16x8xf32>
    %288 = vector.shape_cast %287 : vector<1x16x8xf32> to vector<16x8xf32>
    %289 = arith.truncf %288 : vector<16x8xf32> to vector<16x8xbf16>
    %290 = vector.extract_strided_slice %283 {offsets = [2, 0, 0], sizes = [1, 16, 8], strides = [1, 1, 1]} : vector<4x16x8xf32> to vector<1x16x8xf32>
    %291 = vector.shape_cast %290 : vector<1x16x8xf32> to vector<16x8xf32>
    %292 = arith.truncf %291 : vector<16x8xf32> to vector<16x8xbf16>
    %293 = vector.extract_strided_slice %283 {offsets = [3, 0, 0], sizes = [1, 16, 8], strides = [1, 1, 1]} : vector<4x16x8xf32> to vector<1x16x8xf32>
    %294 = vector.shape_cast %293 : vector<1x16x8xf32> to vector<16x8xf32>
    %295 = arith.truncf %294 : vector<16x8xf32> to vector<16x8xbf16>
    %296 = tpu.concatenate %286, %289, %292, %295 in 1 : vector<16x8xbf16>, vector<16x8xbf16>, vector<16x8xbf16>, vector<16x8xbf16> -> vector<16x32xbf16>
    %c0_109 = arith.constant 0 : index
    %c0_110 = arith.constant 0 : index
    %c0_111 = arith.constant 0 : index
    %297 = vector.load %arg10[%c0_109, %c0_110, %c0_111] : memref<1x32x32xbf16, #tpu.memory_space<vmem>>, vector<1x32x32xbf16>
    %298 = vector.shape_cast %297 : vector<1x32x32xbf16> to vector<32x32xbf16>
    %cst_112 = arith.constant dense<0.000000e+00> : vector<16x32xf32>
    %299 = tpu.matmul %296, %298, %cst_112 {dimension_numbers = #tpu.dot_dimension_numbers<[1], [0], [0], [1], [0, 0, 1, 1], [], []>} : vector<16x32xbf16>, vector<32x32xbf16>, vector<16x32xf32> -> vector<16x32xf32>
    %c0_113 = arith.constant 0 : index
    %c0_114 = arith.constant 0 : index
    %c0_115 = arith.constant 0 : index
    %300 = vector.load %arg11[%c0_113, %c0_114, %c0_115] : memref<1x1x32xf32, #tpu.memory_space<vmem>>, vector<1x1x32xf32>
    %301 = vector.shape_cast %300 : vector<1x1x32xf32> to vector<1x32xf32>
    %302 = vector.broadcast %301 : vector<1x32xf32> to vector<16x32xf32>
    %303 = arith.addf %299, %302 : vector<16x32xf32>
    %304 = arith.addf %182, %303 : vector<16x32xf32>
    %c0_116 = arith.constant 0 : index
    %c0_117 = arith.constant 0 : index
    %c0_118 = arith.constant 0 : index
    %305 = vector.load %arg12[%c0_116, %c0_117, %c0_118] : memref<1x1x32xf32, #tpu.memory_space<vmem>>, vector<1x1x32xf32>
    %306 = vector.shape_cast %305 : vector<1x1x32xf32> to vector<1x32xf32>
    %c0_119 = arith.constant 0 : index
    %c0_120 = arith.constant 0 : index
    %c0_121 = arith.constant 0 : index
    %307 = vector.load %arg13[%c0_119, %c0_120, %c0_121] : memref<1x1x32xf32, #tpu.memory_space<vmem>>, vector<1x1x32xf32>
    %308 = vector.shape_cast %307 : vector<1x1x32xf32> to vector<1x32xf32>
    %cst_122 = arith.constant dense<0.000000e+00> : vector<16xf32>
    %309 = vector.multi_reduction <add>, %304, %cst_122 [1] : vector<16x32xf32> to vector<16xf32>
    %310 = vector.shape_cast %309 : vector<16xf32> to vector<16x1xf32>
    %cst_123 = arith.constant 3.200000e+01 : f32
    %311 = vector.broadcast %cst_123 : f32 to vector<16x1xf32>
    %312 = arith.divf %310, %311 : vector<16x1xf32>
    %313 = vector.broadcast %312 : vector<16x1xf32> to vector<16x32xf32>
    %314 = arith.subf %304, %313 : vector<16x32xf32>
    %315 = arith.mulf %314, %314 : vector<16x32xf32>
    %cst_124 = arith.constant dense<0.000000e+00> : vector<16xf32>
    %316 = vector.multi_reduction <add>, %315, %cst_124 [1] : vector<16x32xf32> to vector<16xf32>
    %317 = vector.shape_cast %316 : vector<16xf32> to vector<16x1xf32>
    %cst_125 = arith.constant 3.200000e+01 : f32
    %318 = vector.broadcast %cst_125 : f32 to vector<16x1xf32>
    %319 = arith.divf %317, %318 : vector<16x1xf32>
    %320 = vector.broadcast %312 : vector<16x1xf32> to vector<16x32xf32>
    %321 = arith.subf %304, %320 : vector<16x32xf32>
    %cst_126 = arith.constant 9.99999974E-6 : f32
    %322 = vector.broadcast %cst_126 : f32 to vector<16x1xf32>
    %323 = arith.addf %319, %322 : vector<16x1xf32>
    %324 = math.rsqrt %323 : vector<16x1xf32>
    %325 = vector.broadcast %324 : vector<16x1xf32> to vector<16x32xf32>
    %326 = arith.mulf %321, %325 : vector<16x32xf32>
    %327 = vector.broadcast %306 : vector<1x32xf32> to vector<16x32xf32>
    %328 = arith.mulf %326, %327 : vector<16x32xf32>
    %329 = vector.broadcast %308 : vector<1x32xf32> to vector<16x32xf32>
    %330 = arith.addf %328, %329 : vector<16x32xf32>
    %331 = arith.truncf %330 : vector<16x32xf32> to vector<16x32xbf16>
    %c0_127 = arith.constant 0 : index
    %c0_128 = arith.constant 0 : index
    %c0_129 = arith.constant 0 : index
    %332 = vector.load %arg14[%c0_127, %c0_128, %c0_129] : memref<1x32x128xbf16, #tpu.memory_space<vmem>>, vector<1x32x128xbf16>
    %333 = vector.shape_cast %332 : vector<1x32x128xbf16> to vector<32x128xbf16>
    %cst_130 = arith.constant dense<0.000000e+00> : vector<16x128xf32>
    %334 = tpu.matmul %331, %333, %cst_130 {dimension_numbers = #tpu.dot_dimension_numbers<[1], [0], [0], [1], [0, 0, 1, 1], [], []>} : vector<16x32xbf16>, vector<32x128xbf16>, vector<16x128xf32> -> vector<16x128xf32>
    %c0_131 = arith.constant 0 : index
    %c0_132 = arith.constant 0 : index
    %c0_133 = arith.constant 0 : index
    %335 = vector.load %arg15[%c0_131, %c0_132, %c0_133] : memref<1x1x128xf32, #tpu.memory_space<vmem>>, vector<1x1x128xf32>
    %336 = vector.shape_cast %335 : vector<1x1x128xf32> to vector<1x128xf32>
    %337 = vector.broadcast %336 : vector<1x128xf32> to vector<16x128xf32>
    %338 = arith.addf %334, %337 : vector<16x128xf32>
    %cst_134 = arith.constant 1.702000e+00 : f32
    %339 = vector.broadcast %cst_134 : f32 to vector<16x128xf32>
    %340 = arith.mulf %339, %338 : vector<16x128xf32>
    %341 = arith.negf %340 : vector<16x128xf32>
    %342 = math.exp %341 : vector<16x128xf32>
    %cst_135 = arith.constant 1.000000e+00 : f32
    %343 = vector.broadcast %cst_135 : f32 to vector<16x128xf32>
    %344 = arith.addf %343, %342 : vector<16x128xf32>
    %345 = arith.divf %343, %344 : vector<16x128xf32>
    %346 = arith.mulf %338, %345 : vector<16x128xf32>
    %347 = arith.truncf %346 : vector<16x128xf32> to vector<16x128xbf16>
    %c0_136 = arith.constant 0 : index
    %c0_137 = arith.constant 0 : index
    %c0_138 = arith.constant 0 : index
    %348 = vector.load %arg16[%c0_136, %c0_137, %c0_138] : memref<1x128x32xbf16, #tpu.memory_space<vmem>>, vector<1x128x32xbf16>
    %349 = vector.shape_cast %348 : vector<1x128x32xbf16> to vector<128x32xbf16>
    %cst_139 = arith.constant dense<0.000000e+00> : vector<16x32xf32>
    %350 = tpu.matmul %347, %349, %cst_139 {dimension_numbers = #tpu.dot_dimension_numbers<[1], [0], [0], [1], [0, 0, 1, 1], [], []>} : vector<16x128xbf16>, vector<128x32xbf16>, vector<16x32xf32> -> vector<16x32xf32>
    %c0_140 = arith.constant 0 : index
    %c0_141 = arith.constant 0 : index
    %c0_142 = arith.constant 0 : index
    %351 = vector.load %arg17[%c0_140, %c0_141, %c0_142] : memref<1x1x32xf32, #tpu.memory_space<vmem>>, vector<1x1x32xf32>
    %352 = vector.shape_cast %351 : vector<1x1x32xf32> to vector<1x32xf32>
    %353 = vector.broadcast %352 : vector<1x32xf32> to vector<16x32xf32>
    %354 = arith.addf %350, %353 : vector<16x32xf32>
    %355 = arith.addf %304, %354 : vector<16x32xf32>
    %c1_143 = arith.constant 1 : index
    %c0_144 = arith.constant 0 : index
    %c0_145 = arith.constant 0 : index
    %356 = vector.load %arg18[%c1_143, %c0_144, %c0_145] : memref<2x16x32xf32, #tpu.memory_space<vmem>>, vector<1x16x32xf32>
    %357 = vector.shape_cast %356 : vector<1x16x32xf32> to vector<16x32xf32>
    %358 = vector.shape_cast %355 : vector<16x32xf32> to vector<1x16x32xf32>
    tpu.vector_store %arg18[%c1_143, %c0_144, %c0_145], %358 {strides = array<i32>} : memref<2x16x32xf32, #tpu.memory_space<vmem>>, vector<1x16x32xf32>,
    return
  }
  func.func @transform_0(%arg0: i32, %arg1: i32) -> (i32, i32, i32) {
    %c0_i32 = arith.constant 0 : i32
    %c0_i32_0 = arith.constant 0 : i32
    %c0_i32_1 = arith.constant 0 : i32
    return %arg0, %c0_i32, %c0_i32_0 : i32, i32, i32
  }
  func.func @transform_1(%arg0: i32, %arg1: i32) -> (i32, i32, i32) {
    %c0_i32 = arith.constant 0 : i32
    %c0_i32_0 = arith.constant 0 : i32
    %c0_i32_1 = arith.constant 0 : i32
    return %arg0, %c0_i32, %c0_i32_0 : i32, i32, i32
  }
  func.func @transform_2(%arg0: i32, %arg1: i32) -> (i32, i32, i32) {
    %c0_i32 = arith.constant 0 : i32
    %c0_i32_0 = arith.constant 0 : i32
    %c0_i32_1 = arith.constant 0 : i32
    return %arg1, %c0_i32, %c0_i32_0 : i32, i32, i32
  }
  func.func @transform_3(%arg0: i32, %arg1: i32) -> (i32, i32, i32) {
    %c0_i32 = arith.constant 0 : i32
    %c0_i32_0 = arith.constant 0 : i32
    %c0_i32_1 = arith.constant 0 : i32
    return %arg1, %c0_i32, %c0_i32_0 : i32, i32, i32
  }
  func.func @transform_4(%arg0: i32, %arg1: i32) -> (i32, i32, i32) {
    %c0_i32 = arith.constant 0 : i32
    %c0_i32_0 = arith.constant 0 : i32
    %c0_i32_1 = arith.constant 0 : i32
    return %arg1, %c0_i32, %c0_i32_0 : i32, i32, i32
  }
  func.func @transform_5(%arg0: i32, %arg1: i32) -> (i32, i32, i32) {
    %c0_i32 = arith.constant 0 : i32
    %c0_i32_0 = arith.constant 0 : i32
    %c0_i32_1 = arith.constant 0 : i32
    return %arg1, %c0_i32, %c0_i32_0 : i32, i32, i32
  }
  func.func @transform_6(%arg0: i32, %arg1: i32) -> (i32, i32, i32) {
    %c0_i32 = arith.constant 0 : i32
    %c0_i32_0 = arith.constant 0 : i32
    %c0_i32_1 = arith.constant 0 : i32
    return %arg1, %c0_i32, %c0_i32_0 : i32, i32, i32
  }
  func.func @transform_7(%arg0: i32, %arg1: i32) -> (i32, i32, i32) {
    %c0_i32 = arith.constant 0 : i32
    %c0_i32_0 = arith.constant 0 : i32
    %c0_i32_1 = arith.constant 0 : i32
    return %arg1, %c0_i32, %c0_i32_0 : i32, i32, i32
  }
  func.func @transform_8(%arg0: i32, %arg1: i32) -> (i32, i32, i32) {
    %c0_i32 = arith.constant 0 : i32
    %c0_i32_0 = arith.constant 0 : i32
    %c0_i32_1 = arith.constant 0 : i32
    return %arg1, %c0_i32, %c0_i32_0 : i32, i32, i32
  }
  func.func @transform_9(%arg0: i32, %arg1: i32) -> (i32, i32, i32) {
    %c0_i32 = arith.constant 0 : i32
    %c0_i32_0 = arith.constant 0 : i32
    %c0_i32_1 = arith.constant 0 : i32
    return %arg1, %c0_i32, %c0_i32_0 : i32, i32, i32
  }
  func.func @transform_10(%arg0: i32, %arg1: i32) -> (i32, i32, i32) {
    %c0_i32 = arith.constant 0 : i32
    %c0_i32_0 = arith.constant 0 : i32
    %c0_i32_1 = arith.constant 0 : i32
    return %arg1, %c0_i32, %c0_i32_0 : i32, i32, i32
  }
  func.func @transform_11(%arg0: i32, %arg1: i32) -> (i32, i32, i32) {
    %c0_i32 = arith.constant 0 : i32
    %c0_i32_0 = arith.constant 0 : i32
    %c0_i32_1 = arith.constant 0 : i32
    return %arg1, %c0_i32, %c0_i32_0 : i32, i32, i32
  }
  func.func @transform_12(%arg0: i32, %arg1: i32) -> (i32, i32, i32) {
    %c0_i32 = arith.constant 0 : i32
    %c0_i32_0 = arith.constant 0 : i32
    %c0_i32_1 = arith.constant 0 : i32
    return %arg1, %c0_i32, %c0_i32_0 : i32, i32, i32
  }
  func.func @transform_13(%arg0: i32, %arg1: i32) -> (i32, i32, i32) {
    %c0_i32 = arith.constant 0 : i32
    %c0_i32_0 = arith.constant 0 : i32
    %c0_i32_1 = arith.constant 0 : i32
    return %arg1, %c0_i32, %c0_i32_0 : i32, i32, i32
  }
  func.func @transform_14(%arg0: i32, %arg1: i32) -> (i32, i32, i32) {
    %c0_i32 = arith.constant 0 : i32
    %c0_i32_0 = arith.constant 0 : i32
    %c0_i32_1 = arith.constant 0 : i32
    return %arg1, %c0_i32, %c0_i32_0 : i32, i32, i32
  }
  func.func @transform_15(%arg0: i32, %arg1: i32) -> (i32, i32, i32) {
    %c0_i32 = arith.constant 0 : i32
    %c0_i32_0 = arith.constant 0 : i32
    %c0_i32_1 = arith.constant 0 : i32
    return %arg1, %c0_i32, %c0_i32_0 : i32, i32, i32
  }
  func.func @transform_16(%arg0: i32, %arg1: i32) -> (i32, i32, i32) {
    %c0_i32 = arith.constant 0 : i32
    %c0_i32_0 = arith.constant 0 : i32
    %c0_i32_1 = arith.constant 0 : i32
    return %arg0, %c0_i32, %c0_i32_0 : i32, i32, i32
  }
}

</mosaic_0001>

<bundles_post_ra>
// kernel: tpu_custom_call.1
= control target key start
LH: loop header
LB: loop body
LE: loop exit
PB: predicated region body
PF: predicated region fallthrough
CT: control target
= control target key end

     0   :  { %s4402_s0 = inlined_call_operand.vmem [shape: f32[2,16,32], index: 0, kind: input, shape index: {}]   ;;  %s4403_s1 = inlined_call_operand.hbm [shape: bf16[2,8,8], index: 1, kind: input, shape index: {}]   ;;  %s4404_s2 = inlined_call_operand.vmem [shape: f32[2,1,32], index: 2, kind: input, shape index: {}]   ;;  %s4405_s3 = inlined_call_operand.vmem [shape: f32[2,1,32], index: 3, kind: input, shape index: {}]   ;;  %s4406_s4 = inlined_call_operand.vmem [shape: bf16[2,32,96], index: 4, kind: input, shape index: {}]   ;;  %s4407_s5 = inlined_call_operand.vmem [shape: f32[2,1,96], index: 5, kind: input, shape index: {}]   ;;  %s4408_s6 = inlined_call_operand.vmem [shape: bf16[2,32,32], index: 6, kind: input, shape index: {}]   ;;  %s4409_s7 = inlined_call_operand.vmem [shape: f32[2,1,32], index: 7, kind: input, shape index: {}]   ;;  %s4410_s8 = inlined_call_operand.vmem [shape: bf16[2,32,32], index: 8, kind: input, shape index: {}]   ;;  %s4411_s9 = inlined_call_operand.vmem [shape: f32[2,1,32], index: 9, kind: input, shape index: {}]   ;;  %s4412_s10 = inlined_call_operand.vmem [shape: f32[2,1,32], index: 10, kind: input, shape index: {}]   ;;  %s4413_s11 = inlined_call_operand.vmem [shape: f32[2,1,32], index: 11, kind: input, shape index: {}]   ;;  %s4414_s12 = inlined_call_operand.vmem [shape: bf16[2,32,128], index: 12, kind: input, shape index: {}]   ;;  %s4415_s13 = inlined_call_operand.vmem [shape: f32[2,1,128], index: 13, kind: input, shape index: {}]   ;;  %s4416_s14 = inlined_call_operand.vmem [shape: bf16[2,128,32], index: 14, kind: input, shape index: {}]   ;;  %s4417_s15 = inlined_call_operand.vmem [shape: f32[2,1,32], index: 15, kind: input, shape index: {}]   ;;  %s4418_s16 = inlined_call_operand.hbm [shape: f32[2,16,32], index: 16, kind: output, shape index: {}]  }
   0x1   :  { %4424 = sst [smem:[#allocation11_spill]] %s4402_s0 }
   0x2   :  { %4425 = sst [smem:[#allocation12_spill]] %s4403_s1 }
   0x3   :  { %4426 = sst [smem:[#allocation13_spill]] %s4405_s3 }
   0x4   :  { %4427 = sst [smem:[#allocation14_spill]] %s4406_s4 }
   0x5   :  { %4428 = sst [smem:[#allocation15_spill]] %s4407_s5 }
   0x6   :  { %4429 = sst [smem:[#allocation16_spill]] %s4408_s6 }
   0x7   :  { %4430 = sst [smem:[#allocation17_spill]] %s4410_s8 }
   0x8   :  { %4431 = sst [smem:[#allocation18_spill]] %s4418_s16 }
   0x9   :  { %21 = vsyncpa [#allocation3], 0 }
   0xa   :  { %22 = vsyncpa [#allocation4], 0  ;;  %s3802_s21 = smov 0   ;;  %s3804_s22 = smov 0  }
   0xb   :  { %s3806_s23 = smov 0  }
   0xc LB: > { %4432 = sst [smem:[#allocation8_spill]] %s3696_s22  ;;  %s4420_s24 = sadd.s32 4294967295, %s3700_s23   ;;  %s3700_s23 = sphi %s3806_s23, %s28_s23   ;;  %s3696_s22 = sphi %s3804_s22, %s4458_s22   ;;  %s3692_s21 = sphi %s3802_s21, %s4457_s21  }
   0xd   : > { %4433 = sst [smem:[#allocation9_spill]] %s3700_s23  ;;  %s37_s25 = sadd.s32 1, %s3696_s22 }
   0xe   : > { %p38_p0 = scmp.ge.s32.totalorder %s37_s25, 2  ;;  %p3059_p1 = scmp.ge.s32.totalorder %s3700_s23, 1 }
   0xf   : > { %p487_p2 = scmp.lt.s32.totalorder %s3700_s23, 3  ;;  %p3829_p4 = scmp.eq.s32.totalorder %s4420_s24, 0 }
  0x10   : > { %s4460_s25 = smov (%p38_p0, %s37_s25), 0  ;;  %s3702_s28 = smov [#allocation2]  }
  0x11   : > { %4434 = sst [smem:[#allocation10_spill]] %s4460_s25  ;;  %p3823_p3 = pnand %p3059_p1, %p487_p2 }
  0x12   : > { %s512_s29 = sshll.u32 %s3702_s28, 4  ;;  %s513_s29 = int_to_ptr.vmem [resolvable:$true] %s512_s29 }
  0x13   : > { %p3445_p5 = pneg %p3823_p3  ;;  %s3631_s30 = scalar_lea.vmem %s513_s29, 128 }
  0x14   : > { %p3632_p8 = scmp.ne.s32.totalorder %s513_s29, %s3631_s30  ;;  %p3639_p11 = scmp.lt.s32.totalorder %s513_s29, %s513_s29 }
  0x15   : > { %p3446_p6 = pnand %p3829_p4, %p3445_p5  ;;  %p3640_p12 = scmp.lt.s32.totalorder %s3631_s30, %s3631_s30 }
  0x17   : > { %p3622_p7 = pneg %p3446_p6  ;;  %p3641_p13 = por %p3640_p12, %p3639_p11 }
  0x19   : > { %p3634_p9 = pnand %p3632_p8, %p3622_p7 }
  0x1b   : > { %p3635_p10 = pneg %p3634_p9 }
  0x1d   : > { %p3642_p0 = pnand %p3641_p13, %p3635_p10 }
  0x1f   : > { %3645 = shalt.err (!%p3642_p0)
}
  0x20   : > { %s3703_s0 = smov 64   ;;  %s3704_s17 = smov 4  }
  0x21   : > { %s4437_s1 = sld [smem:[#allocation12_spill]] }
  0x23   : > { %622 = sbr.rel (%p3823_p3) target bundleno = 4449 (0x1161), region = 84 }
  0x27   : > { %3448 = dma.hbm_to_vmem [thread:$0]  (!%p3446_p6), %s4437_s1, 128, %s513_s29, [#allocation3], %s3703_s0, %s3703_s0, %s3704_s17  }
  0x28   : > { %3683 = dma.done.wait (%p3829_p4), [#allocation3], 128  }
  0x29   : > { %3685 = vsyncadd (%p3829_p4), [#allocation3], 4294967168  ;;  %p728_p1 = scmp.lt.s32.totalorder %s3692_s21, 1  ;;  %s4440_s4 = sld [smem:[#allocation14_spill]] }
  0x2a   : > { %s4441_s6 = sld [smem:[#allocation16_spill]]  ;;  %p3075_p2 = scmp.ne.s32.totalorder %s3692_s21, 0 }
  0x2b   : > { %s3848_s20 = scalar_select %p728_p1, %s3692_s21, 1 }
  0x2c   : > { %s4442_s8 = sld [smem:[#allocation17_spill]] }
  0x2d   : > { %s3158_s17 = sshll.u32 %s3848_s20, 4  ;;  %s771_s27 = scalar_lea.vmem %s4415_s13, %s3848_s20 }
  0x2e   : > { %s3897_s26 = scalar_lea.vmem %s4414_s12, %s3158_s17  ;;  %s779_s22 = scalar_lea.vmem %s4417_s15, %s3848_s20 }
  0x2f   : > { %s3866_s1 = scalar_lea.vmem %s4440_s4, %s3158_s17  ;;  %s760_s4 = scalar_lea.vmem %s4412_s10, %s3848_s20 }
  0x30   : > { %s3871_s16 = scalar_lea.vmem %s4441_s6, %s3158_s17  ;;  %s763_s6 = scalar_lea.vmem %s4413_s11, %s3848_s20 }
  0x31   : > { %785 = sbr.rel (%p3075_p2) target bundleno = 58 (0x3a), region = 92  ;;  %s4443_s25 = sld [smem:[#allocation11_spill]] (!%p3075_p2) }
  0x32   : > { %s3880_s3 = scalar_lea.vmem %s4442_s8, %s3158_s17  ;;  %s3162_s8 = sshll.u32 %s3848_s20, 6 }
  0x33   : > { %s3907_s24 = scalar_lea.vmem %s4416_s14, %s3162_s8 }
  0x36   : > { %vm790_vm0 = vcmask 261120  }
  0x37   : > { %v786_v0 = vld [vmem:[%s4443_s25] sm:$0xff]  ;;  %v787_v1 = vld [vmem:[%s4443_s25 + $0x8] sm:$0xff]  ;;  %v788_v2 = vld [vmem:[%s4443_s25 + $0x10] sm:$0xff] }
  0x38   : > { %791 = vst.msk [vmem:[#allocation5] sm:$0xff] %vm790_vm0, %v786_v0  ;;  %792 = vst.msk [vmem:[#allocation5 + $0x8] sm:$0xff] %vm790_vm0, %v787_v1  ;;  %v789_v3 = vld [vmem:[%s4443_s25 + $0x18] sm:$0xff] }
  0x39   : > { %793 = vst.msk [vmem:[#allocation5 + $0x10] sm:$0xff] %vm790_vm0, %v788_v2  ;;  %794 = vst.msk [vmem:[#allocation5 + $0x18] sm:$0xff] %vm790_vm0, %v789_v3 }
  0x3a PF: > { %vm799_vm1 = vcmask 261120   ;;  %v3492_v18 = vld [vmem:[%s3866_s1 + $0x8] sm:$0xff]   ;;  %v3705_v19 = vmov 0.0   ;;  %vm3706_vm2 = vmmov 0   ;;  %v3493_v20 = vld [vmem:[%s3866_s1] sm:$0xff]   ;;  %s4444_s30 = scalar_lea.vmem %s4404_s2, %s3848_s20  ;;  %s4445_s23 = sld [smem:[#allocation13_spill]] }
  0x3b   : > { %3237 = vmatprep.subr.bf16.mxu1 %v3705_v19  ;;  %3241 = vmatprep.mubr.msk.bf16.mxu1 %vm3706_vm2, %v3705_v19  ;;  %v3953_v28 = vld [vmem:[%s4444_s30] ss:$0 sm:$0xff]  ;;  %v3494_v35 = vld [vmem:[%s3871_s16 + $0x8] sm:$0xff]   ;;  %s4447_s8 = sld [smem:[#allocation15_spill]]  ;;  %s3707_s21 = smov 120   ;;  %vm999_vm3 = vcmask 64512  }
  0x3c   : > { %3238 = vmatpush3.bf16.msra.mxu1 %v3492_v18  ;;  %3265 = vmatprep.subr.bf16.mxu0 %v3705_v19  ;;  %v3495_v38 = vld [vmem:[%s3871_s16] sm:$0xff]   ;;  %s3708_s28 = smov 112   ;;  %s4449_s17 = scalar_lea.vmem %s4409_s7, %s3848_s20  ;;  %vm1291_vm4 = vcmask 1043456   ;;  %vm1499_vm5 = vcmask 130048   ;;  %vm1502_vm6 = vcmask 195584  }
  0x3d   : > { %3239 = vmatprep.subr.bf16.mxu1 %v3705_v19  ;;  %3267 = vmatprep.mubr.msk.bf16.mxu0 %vm3706_vm2, %v3705_v19  ;;  %v3995_v48 = vld [vmem:[%s4449_s17] ss:$0 sm:$0xff]  ;;  %s3711_s29 = smov 64   ;;  %s3712_s18 = smov 8  }
  0x3e   : > { %s4450_s17 = scalar_lea.vmem %s4411_s9, %s3848_s20 }
  0x3f   : > { %v3926_v4 = vld [vmem:[#allocation5 + $0x8] sm:$0xff]  ;;  %v3928_v5 = vld [vmem:[#allocation5] sm:$0xff] }
  0x40   : > { %v803_v6 = vsel %vm799_vm1, %v3926_v4, 0.0  ;;  %v800_v7 = vsel %vm799_vm1, %v3928_v5, 0.0  ;;  %3240 = vmatpush3.bf16.msra.mxu1 %v3493_v20  ;;  %s4446_s0 = scalar_lea.vmem %s4445_s23, %s3848_s20  ;;  %s3709_s23 = smov 104  }
  0x41   : > { %804 = vadd.xlane.f32.xlu0 %v803_v6  ;;  %3245 = vmatprep.subr.bf16.mxu1 %v3705_v19  ;;  %v3960_v30 = vld [vmem:[%s4446_s0] ss:$0 sm:$0xff]  ;;  %s4448_s19 = scalar_lea.vmem %s4447_s8, %s3848_s20  ;;  %s3710_s0 = smov 96  }
  0x42   : > { %v3981_v41 = vld [vmem:[%s4448_s19] ss:$0 sm:$0xff]  ;;  %s3713_s8 = smov 16   ;;  %s4423_s19 = smov 24  }
  0x43   : > { %s4452_s20 = sld [smem:[#allocation9_spill]] }
  0x45   : > { %801 = vadd.xlane.f32.xlu0 %v800_v7 }
  0xca   : > { %v805_v8 = vpop.xlane.xlu0 %804 }
  0xcb   : > { %v808_v9 = vmul.f32 0.03125, %v805_v8 }
  0xcd   : > { %v810_v10 = vsub.f32 %v3926_v4, %v808_v9  ;;  %v995_v9 = vld [vmem:[#allocation2] sm:$0xf] }
  0xce   : > { %v802_v11 = vpop.xlane.xlu0 %801 }
  0xcf   : > { %v807_v12 = vmul.f32 0.03125, %v802_v11  ;;  %v812_v13 = vmul.f32 %v810_v10, %v810_v10 }
  0xd1   : > { %v809_v14 = vsub.f32 %v3928_v5, %v807_v12  ;;  %v816_v15 = vsel %vm799_vm1, %v812_v13, 0.0 }
  0xd2   : > { %817 = vadd.xlane.f32.xlu1 %v816_v15 }
  0xd3   : > { %v811_v16 = vmul.f32 %v809_v14, %v809_v14 }
  0xd5   : > { %v813_v17 = vsel %vm799_vm1, %v811_v16, 0.0 }
  0xd6   : > { %814 = vadd.xlane.f32.xlu1 %v813_v17 }
 0x15b   : > { %v818_v21 = vpop.xlane.xlu1 %817 }
 0x15c   : > { %v820_v22 = vmul.f32 0.03125, %v818_v21 }
 0x15e   : > { %v822_v23 = vadd.f32 1e-05, %v820_v22 }
 0x15f   : > { %v815_v24 = vpop.xlane.xlu1 %814 }
 0x160   : > { %3524 = vrsqrt.f32 %v822_v23  ;;  %v819_v25 = vmul.f32 0.03125, %v815_v24 }
 0x162   : > { %v821_v26 = vadd.f32 1e-05, %v819_v25 }
 0x164   : > { %3526 = vrsqrt.f32 %v821_v26 }
 0x16d   : > { %v3525_v27 = vpop.eup %3524 }
 0x16e   : > { %v826_v29 = vmul.f32 %v3525_v27, %v810_v10  ;;  %v996_v10 = vunpack.c.l.bf16 %v995_v9 }
 0x170   : > { %v834_v31 = vmul.f32 %v3953_v28, %v826_v29 }
 0x171   : > { %v3527_v32 = vpop.eup %3526 }
 0x172   : > { %v825_v33 = vmul.f32 %v3527_v32, %v809_v14  ;;  %v842_v34 = vadd.f32 %v3960_v30, %v834_v31 }
 0x174   : > { %v833_v36 = vmul.f32 %v3953_v28, %v825_v33  ;;  %v843_v37 = vpack.c.bf16 %v842_v34, %v842_v34 }
 0x176   : > { %3242 = vmatmul.mubr.msk.bf16.vlgmr.msra.gmra.mxu1 %vm799_vm1, %v843_v37  ;;  %v841_v39 = vadd.f32 %v3960_v30, %v833_v36 }
 0x177   : > { %3246 = vmatpush3.bf16.msra.mxu1 %v3494_v35  ;;  %3249 = vmatprep.mubr.msk.bf16.mxu1 %vm3706_vm2, %v3705_v19 }
 0x178   : > { %3247 = vmatprep.subr.bf16.mxu1 %v3705_v19  ;;  %v844_v40 = vpack.c.bf16 %v841_v39, %v841_v39 }
 0x17b   : > { %3248 = vmatpush3.bf16.msra.mxu1 %v3495_v38 }
 0x17c   : > { %3253 = vmatprep.subr.bf16.mxu1 %v3705_v19 }
 0x17e   : > { %3250 = vmatmul.mubr.msk.bf16.vlgmr.msra.gmra.mxu1 %vm799_vm1, %v844_v40 }
 0x17f   : > { %3255 = vmatprep.mubr.msk.bf16.mxu1 %vm3706_vm2, %v3705_v19 }
 0x236   : > { %v905_v42 = vpop.f32.mrf.mxu1 }
 0x237   : > { %v906_v43 = vadd.f32 %v3981_v41, %v905_v42 }
 0x238   : > { %v3243_v44 = vpop.f32.mrf.mxu1 }
 0x239   : > { %v3984_v45 = vpack.c.bf16 %v906_v43, %v906_v43  ;;  %v978_v52 = vmul.f32 0.35355338, %v906_v43 }
 0x23a   : > { %v908_v46 = vpop.f32.mrf.mxu1 }
 0x23b   : > { %989 = vrot.lane.b32.xlu0 %v3984_v45, %s3707_s21  ;;  %991 = vrot.lane.b32.xlu1 %v3984_v45, %s3708_s28 }
 0x23c   : > { %v3244_v47 = vpop.f32.mrf.mxu1 }
 0x23e   : > { %v971_v49 = vpop.f32.mrf.mxu1 }
 0x23f   : > { %v972_v50 = vadd.f32 %v3995_v48, %v971_v49  ;;  %993 = vrot.lane.b32.xlu1 %v3984_v45, %s3709_s23 }
 0x240   : > { %v3251_v51 = vpop.f32.mrf.mxu1 }
 0x241   : > { %v977_v53 = vmul.f32 0.35355338, %v972_v50 }
 0x242   : > { %v974_v54 = vpop.f32.mrf.mxu1 }
 0x243   : > { %v979_v55 = vpack.c.bf16 %v978_v52, %v977_v53  ;;  %997 = vrot.lane.b32.xlu1 %v3984_v45, %s3710_s0 }
 0x244   : > { %v3252_v56 = vpop.f32.mrf.mxu1 }
 0x2ad   : > { %v4002_v57 = vpop.permute.xlu1 %991  ;;  %v4004_v58 = vpop.permute.xlu0 %989 }
 0x2ae   : > { %1096 = vrot.lane.b32.xlu1 %v4002_v57, %s3710_s0  ;;  %1047 = vrot.lane.b32.xlu0 %v4004_v58, %s3710_s0 }
 0x2b1   : > { %v4010_v59 = vpop.permute.xlu1 %993 }
 0x2b2   : > { %1145 = vrot.lane.b32.xlu1 %v4010_v59, %s3710_s0  ;;  %981 = vrot.lane.b32.xlu0 %v979_v55, %s3707_s21 }
 0x2b5   : > { %v998_v60 = vpop.permute.xlu1 %997 }
 0x2b6   : > { %v1004_v61 = vsel %vm999_vm3, %v998_v60, 0  ;;  %985 = vrot.lane.b32.xlu1 %v979_v55, %s3709_s23  ;;  %983 = vrot.lane.b32.xlu0 %v979_v55, %s3708_s28 }
 0x2b7   : > { %3254 = vmatpush3.bf16.xpose.msra.mxu1 %v1004_v61 }
 0x2b8   : > { %3259 = vmatprep.subr.bf16.mxu1 %v3705_v19 }
 0x2be   : > { %3256 = vmatmul.mubr.msk.bf16.vlgmr.msra.gmra.mxu1 %vm999_vm3, %v979_v55 }
 0x2bf   : > { %3261 = vmatprep.mubr.msk.bf16.mxu1 %vm3706_vm2, %v3705_v19 }
 0x320   : > { %v1097_v62 = vpop.permute.xlu1 %1096  ;;  %v1048_v63 = vpop.permute.xlu0 %1047 }
 0x321   : > { %v1053_v0 = vsel %vm999_vm3, %v1048_v63, 0  ;;  %v1102_v1 = vsel %vm999_vm3, %v1097_v62, 0 }
 0x322   : > { %3260 = vmatpush3.bf16.xpose.msra.mxu1 %v1053_v0  ;;  %3266 = vmatpush3.bf16.xpose.msra.mxu0 %v1102_v1 }
 0x323   : > { %3271 = vmatprep.subr.bf16.mxu1 %v3705_v19  ;;  %3277 = vmatprep.subr.bf16.mxu0 %v3705_v19 }
 0x324   : > { %v982_v2 = vpop.permute.xlu0 %981  ;;  %v1146_v3 = vpop.permute.xlu1 %1145 }
 0x325   : > { %v1151_v7 = vsel %vm999_vm3, %v1146_v3, 0 }
 0x328   : > { %v984_v6 = vpop.permute.xlu0 %983  ;;  %v986_v8 = vpop.permute.xlu1 %985 }
 0x329   : > { %3262 = vmatmul.mubr.msk.bf16.vlgmr.msra.gmra.mxu1 %vm999_vm3, %v982_v2  ;;  %3268 = vmatmul.mubr.msk.bf16.vlgmr.msra.gmra.mxu0 %vm999_vm3, %v984_v6 }
 0x32a   : > { %3272 = vmatpush3.bf16.xpose.msra.mxu1 %v1151_v7  ;;  %3273 = vmatprep.mubr.msk.bf16.mxu1 %vm3706_vm2, %v3705_v19 }
 0x32b   : > { %3283 = vmatprep.subr.bf16.mxu1 %v3705_v19  ;;  %3279 = vmatprep.mubr.msk.bf16.mxu0 %vm3706_vm2, %v3705_v19 }
 0x331   : > { %3274 = vmatmul.mubr.msk.bf16.vlgmr.msra.gmra.mxu1 %vm999_vm3, %v986_v8 }
 0x332   : > { %3285 = vmatprep.mubr.msk.bf16.mxu1 %vm3706_vm2, %v3705_v19 }
 0x37e   : > { %v1040_v11 = vpop.f32.mrf.mxu1 }
 0x37f   : > { %v1041_v12 = vadd.f32 %v1040_v11, %v996_v10 }
 0x380   : > { %v3257_v13 = vpop.f32.mrf.mxu1 }
 0x381   : > { %v1194_v14 = vsel %vm999_vm3, %v1041_v12, -inf }
 0x382   : > { %v1043_v15 = vpop.f32.mrf.mxu1  ;;  %1195 = vmax.xlane.f32.xlu0 %v1194_v14 }
 0x383   : > { %v1197_v16 = vsel %vm999_vm3, %v1043_v15, -inf }
 0x384   : > { %1198 = vmax.xlane.f32.xlu1 %v1197_v16  ;;  %v3258_v17 = vpop.f32.mrf.mxu1 }
 0x3e9   : > { %v1089_v18 = vpop.f32.mrf.mxu1  ;;  %v1138_v20 = vpop.f32.mrf.mxu0 }
 0x3ea   : > { %v1090_v21 = vadd.f32 %v1089_v18, %v996_v10  ;;  %v1139_v32 = vadd.f32 %v1138_v20, %v996_v10 }
 0x3eb   : > { %v3263_v22 = vpop.f32.mrf.mxu1  ;;  %v3269_v23 = vpop.f32.mrf.mxu0 }
 0x3ec   : > { %v1200_v24 = vsel %vm999_vm3, %v1090_v21, -inf  ;;  %v1206_v37 = vsel %vm999_vm3, %v1139_v32, -inf }
 0x3ed   : > { %1201 = vmax.xlane.f32.xlu0 %v1200_v24  ;;  %v1092_v25 = vpop.f32.mrf.mxu1  ;;  %v1141_v26 = vpop.f32.mrf.mxu0 }
 0x3ee   : > { %v1209_v27 = vsel %vm999_vm3, %v1141_v26, -inf  ;;  %v1203_v33 = vsel %vm999_vm3, %v1092_v25, -inf }
 0x3ef   : > { %v3264_v29 = vpop.f32.mrf.mxu1  ;;  %1210 = vmax.xlane.f32.xlu1 %v1209_v27  ;;  %v3270_v31 = vpop.f32.mrf.mxu0 }
 0x3f1   : > { %1204 = vmax.xlane.f32.xlu0 %v1203_v33  ;;  %v1187_v34 = vpop.f32.mrf.mxu1 }
 0x3f2   : > { %v1188_v36 = vadd.f32 %v1187_v34, %v996_v10 }
 0x3f3   : > { %v3275_v35 = vpop.f32.mrf.mxu1 }
 0x3f4   : > { %v1212_v42 = vsel %vm999_vm3, %v1188_v36, -inf }
 0x3f5   : > { %v1190_v38 = vpop.f32.mrf.mxu1  ;;  %1207 = vmax.xlane.f32.xlu0 %v1206_v37 }
 0x3f6   : > { %v1215_v39 = vsel %vm999_vm3, %v1190_v38, -inf }
 0x3f7   : > { %v3276_v40 = vpop.f32.mrf.mxu1  ;;  %1216 = vmax.xlane.f32.xlu1 %v1215_v39 }
 0x3f9   : > { %1213 = vmax.xlane.f32.xlu0 %v1212_v42 }
 0x40b   : > { %v1196_v43 = vpop.xlane.xlu0 %1195 }
 0x40c   : > { %v1218_v44 = vsub.f32 %v1041_v12, %v1196_v43 }
 0x40d   : > { %v1199_v46 = vpop.xlane.xlu1 %1198 }
 0x40e   : > { %v1226_v47 = vmul.f32 1.442695, %v1218_v44  ;;  %v1219_v49 = vsub.f32 %v1043_v15, %v1199_v46 }
 0x410   : > { %3528 = vpow2.f32 %v1226_v47  ;;  %v1228_v50 = vmul.f32 1.442695, %v1219_v49 }
 0x412   : > { %3530 = vpow2.f32 %v1228_v50 }
 0x41d   : > { %v4045_v51 = vpop.eup %3528 }
 0x41e   : > { %v1242_v52 = vsel %vm999_vm3, %v4045_v51, 0.0 }
 0x41f   : > { %v4049_v53 = vpop.eup %3530  ;;  %1243 = vadd.xlane.f32.xlu0 %v1242_v52 }
 0x420   : > { %v1245_v54 = vsel %vm999_vm3, %v4049_v53, 0.0 }
 0x421   : > { %1246 = vadd.xlane.f32.xlu1 %v1245_v54 }
 0x476   : > { %v1202_v55 = vpop.xlane.xlu0 %1201 }
 0x477   : > { %v1220_v56 = vsub.f32 %v1090_v21, %v1202_v55 }
 0x478   : > { %v1211_v60 = vpop.xlane.xlu1 %1210 }
 0x479   : > { %v1230_v61 = vmul.f32 1.442695, %v1220_v56  ;;  %v1223_v62 = vsub.f32 %v1141_v26, %v1211_v60 }
 0x47a   : > { %v1205_v63 = vpop.xlane.xlu0 %1204 }
 0x47b   : > { %3532 = vpow2.f32 %v1230_v61  ;;  %v1221_v0 = vsub.f32 %v1092_v25, %v1205_v63  ;;  %v1236_v1 = vmul.f32 1.442695, %v1223_v62 }
 0x47d   : > { %v1232_v2 = vmul.f32 1.442695, %v1221_v0 }
 0x47e   : > { %v1208_v3 = vpop.xlane.xlu0 %1207 }
 0x47f   : > { %3534 = vpow2.f32 %v1232_v2  ;;  %v1222_v6 = vsub.f32 %v1139_v32, %v1208_v3 }
 0x480   : > { %3536 = vpow2.f32 %v1236_v1  ;;  %v1217_v22 = vpop.xlane.xlu1 %1216 }
 0x481   : > { %v1234_v7 = vmul.f32 1.442695, %v1222_v6  ;;  %v1225_v23 = vsub.f32 %v1190_v38, %v1217_v22 }
 0x482   : > { %v1214_v8 = vpop.xlane.xlu0 %1213 }
 0x483   : > { %3538 = vpow2.f32 %v1234_v7  ;;  %v1224_v9 = vsub.f32 %v1188_v36, %v1214_v8  ;;  %v1240_v24 = vmul.f32 1.442695, %v1225_v23  ;;  %v3496_v8 = vld [vmem:[%s3880_s3 + $0x8] sm:$0xff]  }
 0x485   : > { %v1238_v10 = vmul.f32 1.442695, %v1224_v9 }
 0x487   : > { %3540 = vpow2.f32 %v1238_v10 }
 0x488   : > { %v3533_v11 = vpop.eup %3532  ;;  %3542 = vpow2.f32 %v1240_v24 }
 0x489   : > { %v1248_v12 = vsel %vm999_vm3, %v3533_v11, 0.0 }
 0x48a   : > { %1249 = vadd.xlane.f32.xlu0 %v1248_v12 }
 0x48c   : > { %v3535_v13 = vpop.eup %3534 }
 0x48d   : > { %v1251_v14 = vsel %vm999_vm3, %v3535_v13, 0.0  ;;  %v3537_v15 = vpop.eup %3536 }
 0x48e   : > { %1252 = vadd.xlane.f32.xlu1 %v1251_v14  ;;  %v1257_v17 = vsel %vm999_vm3, %v3537_v15, 0.0 }
 0x490   : > { %v3539_v16 = vpop.eup %3538 }
 0x491   : > { %v1254_v18 = vsel %vm999_vm3, %v3539_v16, 0.0 }
 0x492   : > { %1258 = vadd.xlane.f32.xlu1 %v1257_v17  ;;  %1255 = vadd.xlane.f32.xlu0 %v1254_v18 }
 0x494   : > { %v4057_v20 = vpop.eup %3540 }
 0x495   : > { %v1260_v21 = vsel %vm999_vm3, %v4057_v20, 0.0  ;;  %v3543_v25 = vpop.eup %3542 }
 0x496   : > { %1261 = vadd.xlane.f32.xlu0 %v1260_v21  ;;  %v1263_v26 = vsel %vm999_vm3, %v3543_v25, 0.0 }
 0x4a3   : > { %1336 = vrot.lane.b32.xlu1 %v4004_v58, %s3711_s29 }
 0x4a7   : > { %1385 = vrot.lane.b32.xlu1 %v4002_v57, %s3711_s29 }
 0x4a8   : > { %v1244_v27 = vpop.xlane.xlu0 %1243 }
 0x4aa   : > { %v1247_v29 = vpop.xlane.xlu1 %1246 }
 0x4ab   : > { %3544 = vrcp.f32 %v1247_v29 }
 0x4ac   : > { %1286 = vrot.lane.b32.xlu0 %v3984_v45, %s3711_s29  ;;  %3546 = vrcp.f32 %v1244_v27 }
 0x4b8   : > { %v3545_v32 = vpop.eup %3544 }
 0x4b9   : > { %v3547_v36 = vpop.eup %3546 }
 0x4ba   : > { %v1274_v40 = vmul.f32 %v3547_v36, %v4045_v51 }
 0x4cb   : > { %1264 = vadd.xlane.f32.xlu1 %v1263_v26 }
 0x4dc   : > { %1434 = vrot.lane.b32.xlu1 %v4010_v59, %s3711_s29  ;;  %v1275_v59 = vmul.f32 %v3545_v32, %v4049_v53 }
 0x4de   : > { %v1282_v44 = vpack.c.bf16 %v1275_v59, %v1274_v40 }
 0x513   : > { %v1250_v58 = vpop.xlane.xlu0 %1249 }
 0x514   : > { %3548 = vrcp.f32 %v1250_v58 }
 0x517   : > { %v1253_v57 = vpop.xlane.xlu1 %1252 }
 0x518   : > { %3550 = vrcp.f32 %v1253_v57 }
 0x51b   : > { %v1259_v45 = vpop.xlane.xlu1 %1258  ;;  %v1256_v31 = vpop.xlane.xlu0 %1255 }
 0x51c   : > { %3552 = vrcp.f32 %v1259_v45 }
 0x51d   : > { %3554 = vrcp.f32 %v1256_v31 }
 0x51f   : > { %v1337_v33 = vpop.permute.xlu1 %1336  ;;  %v1262_v34 = vpop.xlane.xlu0 %1261 }
 0x520   : > { %v1342_v35 = vsel %vm1291_vm4, %v1337_v33, 0  ;;  %3556 = vrcp.f32 %v1262_v34  ;;  %v4111_v33 = vld [vmem:[%s4450_s17] ss:$0 sm:$0xff] }
 0x521   : > { %3284 = vmatpush3.bf16.msra.mxu1 %v1342_v35  ;;  %v3549_v37 = vpop.eup %3548 }
 0x522   : > { %3295 = vmatprep.subr.bf16.mxu1 %v3705_v19  ;;  %v1276_v46 = vmul.f32 %v3549_v37, %v3533_v11  ;;  %v3497_v11 = vld [vmem:[%s3880_s3] sm:$0xff]  }
 0x523   : > { %v1287_v38 = vpop.permute.xlu0 %1286  ;;  %v1386_v43 = vpop.permute.xlu1 %1385 }
 0x524   : > { %v1293_v39 = vsel %vm1291_vm4, %v1287_v38, 0  ;;  %v1391_v49 = vsel %vm1291_vm4, %v1386_v43, 0  ;;  %v4123_v43 = vld [vmem:[#allocation5 + $0x18] sm:$0xff] }
 0x525   : > { %v3551_v42 = vpop.eup %3550  ;;  %3278 = vmatpush3.bf16.msra.mxu0 %v1293_v39 }
 0x526   : > { %3289 = vmatprep.subr.bf16.mxu0 %v3705_v19  ;;  %v1277_v47 = vmul.f32 %v3551_v42, %v3535_v13 }
 0x528   : > { %3280 = vmatmul.mubr.msk.bf16.vlgmr.msra.gmra.mxu0 %vm999_vm3, %v1282_v44  ;;  %v1283_v50 = vpack.c.bf16 %v1277_v47, %v1276_v46  ;;  %v4129_v46 = vld [vmem:[#allocation5 + $0x10] sm:$0xff] }
 0x529   : > { %v3553_v52 = vpop.eup %3552  ;;  %3290 = vmatpush3.bf16.msra.mxu0 %v1391_v49  ;;  %3291 = vmatprep.mubr.msk.bf16.mxu0 %vm3706_vm2, %v3705_v19  ;;  %v1823_v47 = vsel %vm799_vm1, %v4129_v46, 0.0 }
 0x52a   : > { %v3555_v53 = vpop.eup %3554  ;;  %3286 = vmatmul.mubr.msk.bf16.vlgmr.msra.gmra.mxu1 %vm999_vm3, %v1283_v50  ;;  %v1279_v51 = vmul.f32 %v3553_v52, %v3537_v15  ;;  %3301 = vmatprep.subr.bf16.mxu0 %v3705_v19 }
 0x52b   : > { %v1278_v54 = vmul.f32 %v3555_v53, %v3539_v16  ;;  %3297 = vmatprep.mubr.msk.bf16.mxu1 %vm3706_vm2, %v3705_v19 }
 0x52d   : > { %v1284_v55 = vpack.c.bf16 %v1279_v51, %v1278_v54  ;;  %v3557_v62 = vpop.eup %3556 }
 0x52e   : > { %v1280_v0 = vmul.f32 %v3557_v62, %v4057_v20 }
 0x530   : > { %3292 = vmatmul.mubr.msk.bf16.vlgmr.msra.gmra.mxu0 %vm999_vm3, %v1284_v55 }
 0x531   : > { %3305 = vmatprep.mubr.msk.bf16.mxu0 %vm3706_vm2, %v3705_v19  ;;  %3302 = vmatpush3.bf16.msra.mxu0 %v3496_v8 }
 0x532   : > { %3303 = vmatprep.subr.bf16.mxu0 %v3705_v19 }
 0x535   : > { %3304 = vmatpush3.bf16.msra.mxu0 %v3497_v11 }
 0x536   : > { %3317 = vmatprep.subr.bf16.mxu0 %v3705_v19 }
 0x554   : > { %v1265_v56 = vpop.xlane.xlu1 %1264 }
 0x555   : > { %3558 = vrcp.f32 %v1265_v56 }
 0x558   : > { %v1435_v60 = vpop.permute.xlu1 %1434 }
 0x559   : > { %v1440_v61 = vsel %vm1291_vm4, %v1435_v60, 0 }
 0x55a   : > { %3296 = vmatpush3.bf16.msra.mxu1 %v1440_v61 }
 0x55b   : > { %3309 = vmatprep.subr.bf16.mxu1 %v3705_v19 }
 0x562   : > { %v3559_v63 = vpop.eup %3558 }
 0x563   : > { %v1281_v1 = vmul.f32 %v3559_v63, %v3543_v25 }
 0x565   : > { %v1285_v2 = vpack.c.bf16 %v1281_v1, %v1280_v0 }
 0x567   : > { %3298 = vmatmul.mubr.msk.bf16.vlgmr.msra.gmra.mxu1 %vm999_vm3, %v1285_v2 }
 0x568   : > { %3313 = vmatprep.mubr.msk.bf16.mxu1 %vm3706_vm2, %v3705_v19 }
 0x5e8   : > { %v1329_v3 = vpop.f32.mrf.mxu0 }
 0x5ea   : > { %v3281_v6 = vpop.f32.mrf.mxu0  ;;  %v1378_v7 = vpop.f32.mrf.mxu1 }
 0x5ec   : > { %v1332_v9 = vpop.f32.mrf.mxu0  ;;  %v3287_v10 = vpop.f32.mrf.mxu1 }
 0x5ed   : > { %v1483_v12 = vpack.c.bf16 %v1332_v9, %v1329_v3  ;;  %v3498_v9 = vld [vmem:[%s3897_s26 + $0x8] sm:$0xff]   ;;  %v3499_v10 = vld [vmem:[%s3897_s26] sm:$0xff]  }
 0x5ee   : > { %v3282_v13 = vpop.f32.mrf.mxu0  ;;  %v1381_v14 = vpop.f32.mrf.mxu1  ;;  %3310 = vmatpush3.bf16.msra.mxu1 %v3498_v9 }
 0x5ef   : > { %v1484_v15 = vpack.c.bf16 %v1381_v14, %v1378_v7  ;;  %3311 = vmatprep.subr.bf16.mxu1 %v3705_v19 }
 0x5f0   : > { %v3288_v16 = vpop.f32.mrf.mxu1  ;;  %v1427_v17 = vpop.f32.mrf.mxu0 }
 0x5f1   : > { %1488 = vrot.lane.b32.xlu0 %v1484_v15, %s3712_s18 }
 0x5f2   : > { %v3293_v18 = vpop.f32.mrf.mxu0  ;;  %3312 = vmatpush3.bf16.msra.mxu1 %v3499_v10 }
 0x5f3   : > { %3337 = vmatprep.subr.bf16.mxu1 %v3705_v19 }
 0x5f4   : > { %v1430_v20 = vpop.f32.mrf.mxu0 }
 0x5f5   : > { %v1485_v21 = vpack.c.bf16 %v1430_v20, %v1427_v17 }
 0x5f6   : > { %v3294_v22 = vpop.f32.mrf.mxu0 }
 0x5f7   : > { %1491 = vrot.lane.b32.xlu1 %v1485_v21, %s3713_s8 }
 0x627   : > { %v1476_v23 = vpop.f32.mrf.mxu1 }
 0x629   : > { %v3299_v24 = vpop.f32.mrf.mxu1 }
 0x62b   : > { %v1479_v25 = vpop.f32.mrf.mxu1 }
 0x62c   : > { %v1486_v26 = vpack.c.bf16 %v1479_v25, %v1476_v23 }
 0x62d   : > { %v3300_v27 = vpop.f32.mrf.mxu1 }
 0x62e   : > { %1494 = vrot.lane.b32.xlu0 %v1486_v26, %s4423_s19  ;;  %v4150_v26 = vld [vmem:[%s760_s4] ss:$0 sm:$0xff] }
 0x663   : > { %v1489_v29 = vpop.permute.xlu0 %1488 }
 0x664   : > { %v1498_v57 = vsel %vm999_vm3, %v1483_v12, %v1489_v29 }
 0x669   : > { %v1492_v58 = vpop.permute.xlu1 %1491 }
 0x66a   : > { %v1501_v45 = vsel %vm1499_vm5, %v1498_v57, %v1492_v58  ;;  %v4158_v57 = vld [vmem:[%s763_s6] ss:$0 sm:$0xff] }
 0x6a0   : > { %v1495_v31 = vpop.permute.xlu0 %1494 }
 0x6a1   : > { %v1504_v32 = vsel %vm1502_vm6, %v1501_v45, %v1495_v31 }
 0x6a2   : > { %3306 = vmatmul.mubr.msk.bf16.vlgmr.msra.gmra.mxu0 %vm799_vm1, %v1504_v32 }
 0x6a3   : > { %3333 = vmatprep.mubr.msk.bf16.mxu0 %vm3706_vm2, %v3705_v19 }
 0x762   : > { %v1564_v34 = vpop.f32.mrf.mxu0 }
 0x763   : > { %v1565_v35 = vadd.f32 %v4111_v33, %v1564_v34 }
 0x764   : > { %v3307_v36 = vpop.f32.mrf.mxu0 }
 0x765   : > { %v4115_v59 = vadd.f32 %v1565_v35, %v3928_v5  ;;  %v1826_v5 = vsel %vm799_vm1, %v4123_v43, 0.0  ;;  %v3500_v36 = vld [vmem:[%s3866_s1 + $0x8] sm:$0xff]  }
 0x766   : > { %v1567_v37 = vpop.f32.mrf.mxu0 }
 0x767   : > { %v1568_v38 = vadd.f32 %v4111_v33, %v1567_v37  ;;  %v1575_v39 = vsel %vm799_vm1, %v4115_v59, 0.0 }
 0x768   : > { %1576 = vadd.xlane.f32.xlu1 %v1575_v39  ;;  %v3308_v40 = vpop.f32.mrf.mxu0 }
 0x769   : > { %v4121_v42 = vadd.f32 %v1568_v38, %v3926_v4  ;;  %v3501_v40 = vld [vmem:[%s3866_s1] sm:$0xff]  }
 0x76b   : > { %v1578_v44 = vsel %vm799_vm1, %v4121_v42, 0.0 }
 0x76c   : > { %1579 = vadd.xlane.f32.xlu0 %v1578_v44 }
 0x770   : > { %1827 = vadd.xlane.f32.xlu0 %v1826_v5 }
 0x774   : > { %1824 = vadd.xlane.f32.xlu0 %v1823_v47  ;;  %v3502_v47 = vld [vmem:[%s3871_s16 + $0x8] sm:$0xff]  }
 0x7f1   : > { %v1577_v49 = vpop.xlane.xlu1 %1576 }
 0x7f2   : > { %v1581_v50 = vmul.f32 0.03125, %v1577_v49 }
 0x7f4   : > { %v1583_v4 = vsub.f32 %v4115_v59, %v1581_v50 }
 0x7f5   : > { %v1580_v52 = vpop.xlane.xlu0 %1579 }
 0x7f6   : > { %v1582_v53 = vmul.f32 0.03125, %v1580_v52  ;;  %v1585_v51 = vmul.f32 %v1583_v4, %v1583_v4 }
 0x7f8   : > { %v1584_v54 = vsub.f32 %v4121_v42, %v1582_v53  ;;  %v1587_v55 = vsel %vm799_vm1, %v1585_v51, 0.0  ;;  %v3505_v51 = vld [vmem:[%s3907_s24 + $0x30] sm:$0xff]  }
 0x7f9   : > { %1588 = vadd.xlane.f32.xlu1 %v1587_v55  ;;  %v1828_v56 = vpop.xlane.xlu0 %1827  ;;  %v3508_v55 = vld [vmem:[%s3907_s24 + $0x18] sm:$0xff]  }
 0x7fa   : > { %v1830_v60 = vmul.f32 0.03125, %v1828_v56  ;;  %v1586_v61 = vmul.f32 %v1584_v54, %v1584_v54  ;;  %v3509_v56 = vld [vmem:[%s3907_s24 + $0x10] sm:$0xff]  }
 0x7fc   : > { %v1832_v62 = vsub.f32 %v4123_v43, %v1830_v60  ;;  %v1590_v63 = vsel %vm799_vm1, %v1586_v61, 0.0  ;;  %v3510_v60 = vld [vmem:[%s3907_s24 + $0x8] sm:$0xff]   ;;  %v3511_v61 = vld [vmem:[%s3907_s24] sm:$0xff]  }
 0x7fd   : > { %1591 = vadd.xlane.f32.xlu0 %v1590_v63  ;;  %v1825_v0 = vpop.xlane.xlu0 %1824 }
 0x7fe   : > { %v1829_v1 = vmul.f32 0.03125, %v1825_v0  ;;  %v1834_v2 = vmul.f32 %v1832_v62, %v1832_v62 }
 0x800   : > { %v1831_v3 = vsub.f32 %v4129_v46, %v1829_v1  ;;  %v1838_v6 = vsel %vm799_vm1, %v1834_v2, 0.0 }
 0x801   : > { %1839 = vadd.xlane.f32.xlu1 %v1838_v6 }
 0x802   : > { %v1833_v7 = vmul.f32 %v1831_v3, %v1831_v3 }
 0x804   : > { %v1835_v8 = vsel %vm799_vm1, %v1833_v7, 0.0 }
 0x805   : > { %1836 = vadd.xlane.f32.xlu0 %v1835_v8 }
 0x882   : > { %v1589_v11 = vpop.xlane.xlu1 %1588 }
 0x883   : > { %v1593_v12 = vmul.f32 0.03125, %v1589_v11 }
 0x885   : > { %v1595_v13 = vadd.f32 1e-05, %v1593_v12 }
 0x886   : > { %v1592_v14 = vpop.xlane.xlu0 %1591 }
 0x887   : > { %3560 = vrsqrt.f32 %v1595_v13  ;;  %v1594_v15 = vmul.f32 0.03125, %v1592_v14 }
 0x889   : > { %v1596_v16 = vadd.f32 1e-05, %v1594_v15 }
 0x88a   : > { %v1840_v17 = vpop.xlane.xlu1 %1839 }
 0x88b   : > { %3562 = vrsqrt.f32 %v1596_v16  ;;  %v1842_v18 = vmul.f32 0.03125, %v1840_v17 }
 0x88d   : > { %v1844_v20 = vadd.f32 1e-05, %v1842_v18 }
 0x88e   : > { %v1837_v21 = vpop.xlane.xlu0 %1836 }
 0x88f   : > { %3564 = vrsqrt.f32 %v1844_v20  ;;  %v1841_v22 = vmul.f32 0.03125, %v1837_v21 }
 0x891   : > { %v1843_v23 = vadd.f32 1e-05, %v1841_v22 }
 0x893   : > { %3566 = vrsqrt.f32 %v1843_v23 }
 0x894   : > { %v3561_v24 = vpop.eup %3560 }
 0x895   : > { %v1599_v25 = vmul.f32 %v3561_v24, %v1583_v4  ;;  %v3503_v4 = vld [vmem:[%s3871_s16] sm:$0xff]  }
 0x897   : > { %v1607_v58 = vmul.f32 %v4150_v26, %v1599_v25 }
 0x898   : > { %v3563_v27 = vpop.eup %3562 }
 0x899   : > { %v1600_v29 = vmul.f32 %v3563_v27, %v1584_v54  ;;  %v1615_v34 = vadd.f32 %v4158_v57, %v1607_v58  ;;  %v3507_v54 = vld [vmem:[%s3907_s24 + $0x20] sm:$0xff]  }
 0x89b   : > { %v1608_v45 = vmul.f32 %v4150_v26, %v1600_v29 }
 0x89c   : > { %v3565_v31 = vpop.eup %3564 }
 0x89d   : > { %v1848_v32 = vmul.f32 %v3565_v31, %v1832_v62  ;;  %v1616_v35 = vadd.f32 %v4158_v57, %v1608_v45  ;;  %v4205_v62 = vld [vmem:[%s771_s27] ss:$0 sm:$0xff]  ;;  %s3715_s27 = smov [#allocation5]  }
 0x89f   : > { %v1617_v37 = vpack.c.bf16 %v1616_v35, %v1615_v34  ;;  %v1856_v38 = vmul.f32 %v3953_v28, %v1848_v32 }
 0x8a0   : > { %v3567_v39 = vpop.eup %3566 }
 0x8a1   : > { %3314 = vmatmul.mubr.msk.bf16.vlgmr.msra.gmra.mxu1 %vm799_vm1, %v1617_v37  ;;  %v1847_v44 = vmul.f32 %v3567_v39, %v1831_v3  ;;  %v1864_v5 = vadd.f32 %v3960_v30, %v1856_v38 }
 0x8a2   : > { %3338 = vmatpush3.bf16.msra.mxu1 %v3500_v36  ;;  %3341 = vmatprep.mubr.msk.bf16.mxu1 %vm3706_vm2, %v3705_v19 }
 0x8a3   : > { %3339 = vmatprep.subr.bf16.mxu1 %v3705_v19  ;;  %v1865_v49 = vpack.c.bf16 %v1864_v5, %v1864_v5  ;;  %v1855_v50 = vmul.f32 %v3953_v28, %v1847_v44  ;;  %v3504_v28 = vld [vmem:[%s3907_s24 + $0x38] sm:$0xff]  }
 0x8a4   : > { %3318 = vmatpush3.bf16.msra.mxu0 %v3504_v28 }
 0x8a5   : > { %v1863_v52 = vadd.f32 %v3960_v30, %v1855_v50  ;;  %3319 = vmatprep.subr.bf16.mxu0 %v3705_v19  ;;  %v3506_v30 = vld [vmem:[%s3907_s24 + $0x28] sm:$0xff]  }
 0x8a6   : > { %3340 = vmatpush3.bf16.msra.mxu1 %v3501_v40  ;;  %v4248_v40 = vld [vmem:[%s779_s22] ss:$0 sm:$0xff] }
 0x8a7   : > { %3345 = vmatprep.subr.bf16.mxu1 %v3705_v19  ;;  %v1866_v53 = vpack.c.bf16 %v1863_v52, %v1863_v52 }
 0x8a8   : > { %3320 = vmatpush3.bf16.msra.mxu0 %v3505_v51 }
 0x8a9   : > { %3342 = vmatmul.mubr.msk.bf16.vlgmr.msra.gmra.mxu1 %vm799_vm1, %v1865_v49  ;;  %3321 = vmatprep.subr.bf16.mxu0 %v3705_v19 }
 0x8aa   : > { %3346 = vmatpush3.bf16.msra.mxu1 %v3502_v47  ;;  %3349 = vmatprep.mubr.msk.bf16.mxu1 %vm3706_vm2, %v3705_v19 }
 0x8ab   : > { %3347 = vmatprep.subr.bf16.mxu1 %v3705_v19 }
 0x8ac   : > { %3322 = vmatpush3.bf16.msra.mxu0 %v3506_v30 }
 0x8ad   : > { %3323 = vmatprep.subr.bf16.mxu0 %v3705_v19 }
 0x8ae   : > { %3348 = vmatpush3.bf16.msra.mxu1 %v3503_v4 }
 0x8af   : > { %3353 = vmatprep.subr.bf16.mxu1 %v3705_v19 }
 0x8b0   : > { %3324 = vmatpush3.bf16.msra.mxu0 %v3507_v54 }
 0x8b1   : > { %3350 = vmatmul.mubr.msk.bf16.vlgmr.msra.gmra.mxu1 %vm799_vm1, %v1866_v53  ;;  %3325 = vmatprep.subr.bf16.mxu0 %v3705_v19 }
 0x8b2   : > { %3355 = vmatprep.mubr.msk.bf16.mxu1 %vm3706_vm2, %v3705_v19 }
 0x8b4   : > { %3326 = vmatpush3.bf16.msra.mxu0 %v3508_v55 }
 0x8b5   : > { %3327 = vmatprep.subr.bf16.mxu0 %v3705_v19 }
 0x8b8   : > { %3328 = vmatpush3.bf16.msra.mxu0 %v3509_v56 }
 0x8b9   : > { %3329 = vmatprep.subr.bf16.mxu0 %v3705_v19 }
 0x8bc   : > { %3330 = vmatpush3.bf16.msra.mxu0 %v3510_v60 }
 0x8bd   : > { %3331 = vmatprep.subr.bf16.mxu0 %v3705_v19 }
 0x8c0   : > { %3332 = vmatpush3.bf16.msra.mxu0 %v3511_v61  ;;  %v2018_v61 = vld [vmem:[#allocation2 + $0x4] sm:$0xf] }
 0x8c1   : > { %3365 = vmatprep.subr.bf16.mxu0 %v3705_v19 }
 0x961   : > { %v1678_v63 = vpop.f32.mrf.mxu1 }
 0x962   : > { %v1679_v0 = vadd.f32 %v4205_v62, %v1678_v63  ;;  %v2019_v63 = vunpack.c.l.bf16 %v2018_v61 }
 0x963   : > { %v3315_v1 = vpop.f32.mrf.mxu1 }
 0x964   : > { %v3104_v2 = vmul.f32 -1.702, %v1679_v0 }
 0x965   : > { %v1681_v3 = vpop.f32.mrf.mxu1 }
 0x966   : > { %v1689_v6 = vmul.f32 1.442695, %v3104_v2  ;;  %v1682_v7 = vadd.f32 %v4205_v62, %v1681_v3 }
 0x967   : > { %v3316_v8 = vpop.f32.mrf.mxu1 }
 0x968   : > { %3568 = vpow2.f32 %v1689_v6  ;;  %v3105_v9 = vmul.f32 -1.702, %v1682_v7 }
 0x969   : > { %v1927_v10 = vpop.f32.mrf.mxu1 }
 0x96a   : > { %v1691_v11 = vmul.f32 1.442695, %v3105_v9  ;;  %v1928_v12 = vadd.f32 %v3981_v41, %v1927_v10 }
 0x96b   : > { %v3343_v13 = vpop.f32.mrf.mxu1 }
 0x96c   : > { %3570 = vpow2.f32 %v1691_v11  ;;  %v4210_v14 = vpack.c.bf16 %v1928_v12, %v1928_v12  ;;  %v2000_v41 = vmul.f32 0.35355338, %v1928_v12 }
 0x96d   : > { %v1930_v15 = vpop.f32.mrf.mxu1 }
 0x96e   : > { %2013 = vrot.lane.b32.xlu0 %v4210_v14, %s3708_s28  ;;  %2011 = vrot.lane.b32.xlu1 %v4210_v14, %s3707_s21 }
 0x96f   : > { %v3344_v16 = vpop.f32.mrf.mxu1 }
 0x971   : > { %v1993_v17 = vpop.f32.mrf.mxu1 }
 0x972   : > { %v1994_v18 = vadd.f32 %v3995_v48, %v1993_v17  ;;  %2015 = vrot.lane.b32.xlu1 %v4210_v14, %s3709_s23 }
 0x973   : > { %v3351_v20 = vpop.f32.mrf.mxu1 }
 0x974   : > { %v1999_v21 = vmul.f32 0.35355338, %v1994_v18 }
 0x975   : > { %v3569_v22 = vpop.eup %3568  ;;  %v1996_v23 = vpop.f32.mrf.mxu1 }
 0x976   : > { %v1693_v24 = vadd.f32 1.0, %v3569_v22  ;;  %v2001_v25 = vpack.c.bf16 %v2000_v41, %v1999_v21  ;;  %2020 = vrot.lane.b32.xlu1 %v4210_v14, %s3710_s0 }
 0x977   : > { %v3352_v27 = vpop.f32.mrf.mxu1 }
 0x978   : > { %3572 = vrcp.f32 %v1693_v24 }
 0x979   : > { %v3571_v29 = vpop.eup %3570 }
 0x97a   : > { %v1694_v58 = vadd.f32 1.0, %v3571_v29 }
 0x97c   : > { %3574 = vrcp.f32 %v1694_v58 }
 0x985   : > { %v3573_v45 = vpop.eup %3572 }
 0x986   : > { %v1699_v31 = vmul.f32 %v3573_v45, %v1679_v0 }
 0x989   : > { %v3575_v48 = vpop.eup %3574 }
 0x98a   : > { %v1700_v32 = vmul.f32 %v3575_v48, %v1682_v7 }
 0x98c   : > { %v1701_v34 = vpack.c.bf16 %v1700_v32, %v1699_v31 }
 0x98e   : > { %3334 = vmatmul.mubr.bf16.vlgmr.msra.gmra.mxu0 %v1701_v34 }
 0x98f   : > { %3367 = vmatprep.mubr.msk.bf16.mxu0 %vm3706_vm2, %v3705_v19 }
 0x9e0   : > { %v4223_v35 = vpop.permute.xlu1 %2011  ;;  %v4225_v36 = vpop.permute.xlu0 %2013 }
 0x9e1   : > { %2069 = vrot.lane.b32.xlu1 %v4223_v35, %s3710_s0  ;;  %2118 = vrot.lane.b32.xlu0 %v4225_v36, %s3710_s0 }
 0x9e4   : > { %v4231_v37 = vpop.permute.xlu1 %2015 }
 0x9e5   : > { %2003 = vrot.lane.b32.xlu1 %v2001_v25, %s3707_s21  ;;  %2167 = vrot.lane.b32.xlu0 %v4231_v37, %s3710_s0 }
 0x9e8   : > { %v2021_v38 = vpop.permute.xlu1 %2020 }
 0x9e9   : > { %v2026_v39 = vsel %vm999_vm3, %v2021_v38, 0  ;;  %2005 = vrot.lane.b32.xlu1 %v2001_v25, %s3708_s28  ;;  %2007 = vrot.lane.b32.xlu0 %v2001_v25, %s3709_s23 }
 0x9ea   : > { %3354 = vmatpush3.bf16.xpose.msra.mxu1 %v2026_v39 }
 0x9eb   : > { %3359 = vmatprep.subr.bf16.mxu1 %v3705_v19 }
 0x9f1   : > { %3356 = vmatmul.mubr.msk.bf16.vlgmr.msra.gmra.mxu1 %vm999_vm3, %v2001_v25 }
 0x9f2   : > { %3361 = vmatprep.mubr.msk.bf16.mxu1 %vm3706_vm2, %v3705_v19 }
 0xa4e   : > { %v1807_v44 = vpop.f32.mrf.mxu0 }
 0xa4f   : > { %v1808_v5 = vadd.f32 %v4248_v40, %v1807_v44 }
 0xa50   : > { %v3335_v47 = vpop.f32.mrf.mxu0 }
 0xa51   : > { %v1814_v49 = vadd.f32 %v1808_v5, %v4115_v59 }
 0xa52   : > { %v1810_v50 = vpop.f32.mrf.mxu0 }
 0xa53   : > { %1816 = vst.msk [vmem:[#allocation5] sm:$0xff] %vm799_vm1, %v1814_v49  ;;  %v1811_v4 = vadd.f32 %v4248_v40, %v1810_v50  ;;  %v2070_v52 = vpop.permute.xlu1 %2069  ;;  %v2119_v53 = vpop.permute.xlu0 %2118 }
 0xa54   : > { %v2075_v28 = vsel %vm999_vm3, %v2070_v52, 0  ;;  %v2124_v51 = vsel %vm999_vm3, %v2119_v53, 0  ;;  %v3336_v30 = vpop.f32.mrf.mxu0 }
 0xa55   : > { %v1815_v54 = vadd.f32 %v1811_v4, %v4121_v42  ;;  %3360 = vmatpush3.bf16.xpose.msra.mxu1 %v2075_v28  ;;  %3366 = vmatpush3.bf16.xpose.msra.mxu0 %v2124_v51 }
 0xa56   : > { %3371 = vmatprep.subr.bf16.mxu1 %v3705_v19  ;;  %3377 = vmatprep.subr.bf16.mxu0 %v3705_v19 }
 0xa57   : > { %1817 = vst.msk [vmem:[#allocation5 + $0x8] sm:$0xff] %vm799_vm1, %v1815_v54  ;;  %v2004_v59 = vpop.permute.xlu1 %2003  ;;  %v2168_v55 = vpop.permute.xlu0 %2167 }
 0xa58   : > { %v2173_v60 = vsel %vm999_vm3, %v2168_v55, 0 }
 0xa5b   : > { %v2006_v56 = vpop.permute.xlu1 %2005  ;;  %v2008_v42 = vpop.permute.xlu0 %2007 }
 0xa5c   : > { %3362 = vmatmul.mubr.msk.bf16.vlgmr.msra.gmra.mxu1 %vm999_vm3, %v2004_v59  ;;  %3368 = vmatmul.mubr.msk.bf16.vlgmr.msra.gmra.mxu0 %vm999_vm3, %v2006_v56 }
 0xa5d   : > { %3372 = vmatpush3.bf16.xpose.msra.mxu1 %v2173_v60  ;;  %3373 = vmatprep.mubr.msk.bf16.mxu1 %vm3706_vm2, %v3705_v19 }
 0xa5e   : > { %3379 = vmatprep.mubr.msk.bf16.mxu0 %vm3706_vm2, %v3705_v19  ;;  %3383 = vmatprep.subr.bf16.mxu1 %v3705_v19 }
 0xa64   : > { %3374 = vmatmul.mubr.msk.bf16.vlgmr.msra.gmra.mxu1 %vm999_vm3, %v2008_v42 }
 0xa65   : > { %3385 = vmatprep.mubr.msk.bf16.mxu1 %vm3706_vm2, %v3705_v19 }
 0xab1   : > { %v2062_v0 = vpop.f32.mrf.mxu1 }
 0xab2   : > { %v2063_v1 = vadd.f32 %v2062_v0, %v2019_v63 }
 0xab3   : > { %v3357_v2 = vpop.f32.mrf.mxu1 }
 0xab4   : > { %v2216_v3 = vsel %vm999_vm3, %v2063_v1, -inf }
 0xab5   : > { %2217 = vmax.xlane.f32.xlu1 %v2216_v3  ;;  %v2065_v6 = vpop.f32.mrf.mxu1 }
 0xab6   : > { %v2219_v7 = vsel %vm999_vm3, %v2065_v6, -inf }
 0xab7   : > { %v3358_v8 = vpop.f32.mrf.mxu1  ;;  %2220 = vmax.xlane.f32.xlu0 %v2219_v7 }
 0xb1c   : > { %v2111_v9 = vpop.f32.mrf.mxu1  ;;  %v2160_v10 = vpop.f32.mrf.mxu0 }
 0xb1d   : > { %v2112_v11 = vadd.f32 %v2111_v9, %v2019_v63  ;;  %v2161_v12 = vadd.f32 %v2160_v10, %v2019_v63 }
 0xb1e   : > { %v3363_v13 = vpop.f32.mrf.mxu1  ;;  %v3369_v15 = vpop.f32.mrf.mxu0 }
 0xb1f   : > { %v2222_v16 = vsel %vm999_vm3, %v2112_v11, -inf  ;;  %v2228_v17 = vsel %vm999_vm3, %v2161_v12, -inf }
 0xb20   : > { %v2114_v18 = vpop.f32.mrf.mxu1  ;;  %2223 = vmax.xlane.f32.xlu0 %v2222_v16  ;;  %2229 = vmax.xlane.f32.xlu1 %v2228_v17  ;;  %v2163_v20 = vpop.f32.mrf.mxu0 }
 0xb21   : > { %v2225_v22 = vsel %vm999_vm3, %v2114_v18, -inf  ;;  %v2231_v29 = vsel %vm999_vm3, %v2163_v20, -inf }
 0xb22   : > { %v3364_v41 = vpop.f32.mrf.mxu1  ;;  %v3370_v21 = vpop.f32.mrf.mxu0 }
 0xb24   : > { %2226 = vmax.xlane.f32.xlu0 %v2225_v22  ;;  %v2209_v23 = vpop.f32.mrf.mxu1 }
 0xb25   : > { %v2210_v24 = vadd.f32 %v2209_v23, %v2019_v63 }
 0xb26   : > { %v3375_v25 = vpop.f32.mrf.mxu1 }
 0xb27   : > { %v2234_v27 = vsel %vm999_vm3, %v2210_v24, -inf }
 0xb28   : > { %v2212_v58 = vpop.f32.mrf.mxu1  ;;  %2235 = vmax.xlane.f32.xlu1 %v2234_v27  ;;  %2232 = vmax.xlane.f32.xlu0 %v2231_v29 }
 0xb29   : > { %v2237_v48 = vsel %vm999_vm3, %v2212_v58, -inf }
 0xb2a   : > { %v3376_v45 = vpop.f32.mrf.mxu1 }
 0xb2c   : > { %2238 = vmax.xlane.f32.xlu0 %v2237_v48 }
 0xb39   : > { %2308 = vrot.lane.b32.xlu1 %v4210_v14, %s3711_s29 }
 0xb3e   : > { %v2218_v32 = vpop.xlane.xlu1 %2217 }
 0xb3f   : > { %v2240_v39 = vsub.f32 %v2063_v1, %v2218_v32 }
 0xb40   : > { %v2221_v31 = vpop.xlane.xlu0 %2220 }
 0xb41   : > { %v2241_v34 = vsub.f32 %v2065_v6, %v2221_v31  ;;  %v2248_v44 = vmul.f32 1.442695, %v2240_v39 }
 0xb43   : > { %v2250_v38 = vmul.f32 1.442695, %v2241_v34 }
 0xb45   : > { %3576 = vpow2.f32 %v2250_v38 }
 0xb46   : > { %3578 = vpow2.f32 %v2248_v44 }
 0xb52   : > { %v3577_v5 = vpop.eup %3576 }
 0xb53   : > { %v2267_v47 = vsel %vm999_vm3, %v3577_v5, 0.0  ;;  %v3579_v49 = vpop.eup %3578 }
 0xb54   : > { %2268 = vadd.xlane.f32.xlu0 %v2267_v47  ;;  %v2264_v50 = vsel %vm999_vm3, %v3579_v49, 0.0 }
 0xb5d   : > { %2265 = vadd.xlane.f32.xlu1 %v2264_v50 }
 0xba9   : > { %v2224_v4 = vpop.xlane.xlu0 %2223  ;;  %v2230_v52 = vpop.xlane.xlu1 %2229 }
 0xbaa   : > { %v2242_v53 = vsub.f32 %v2112_v11, %v2224_v4  ;;  %v2244_v14 = vsub.f32 %v2161_v12, %v2230_v52 }
 0xbac   : > { %v2252_v28 = vmul.f32 1.442695, %v2242_v53  ;;  %v2256_v51 = vmul.f32 1.442695, %v2244_v14 }
 0xbad   : > { %v2227_v30 = vpop.xlane.xlu0 %2226 }
 0xbae   : > { %3580 = vpow2.f32 %v2252_v28  ;;  %v2243_v54 = vsub.f32 %v2114_v18, %v2227_v30 }
 0xbaf   : > { %3582 = vpow2.f32 %v2256_v51 }
 0xbb0   : > { %v2254_v59 = vmul.f32 1.442695, %v2243_v54 }
 0xbb1   : > { %v2236_v55 = vpop.xlane.xlu1 %2235  ;;  %v2233_v56 = vpop.xlane.xlu0 %2232 }
 0xbb2   : > { %3584 = vpow2.f32 %v2254_v59  ;;  %v2246_v60 = vsub.f32 %v2210_v24, %v2236_v55  ;;  %v2245_v42 = vsub.f32 %v2163_v20, %v2233_v56 }
 0xbb4   : > { %v2260_v61 = vmul.f32 1.442695, %v2246_v60  ;;  %v2258_v63 = vmul.f32 1.442695, %v2245_v42 }
 0xbb5   : > { %v2309_v0 = vpop.permute.xlu1 %2308  ;;  %v2239_v1 = vpop.xlane.xlu0 %2238 }
 0xbb6   : > { %3586 = vpow2.f32 %v2260_v61  ;;  %v2314_v2 = vsel %vm1291_vm4, %v2309_v0, 0  ;;  %v2247_v3 = vsub.f32 %v2212_v58, %v2239_v1  ;;  %v3512_v0 = vld [vmem:[%s3880_s3 + $0x8] sm:$0xff]   ;;  %v3513_v1 = vld [vmem:[%s3880_s3] sm:$0xff]   ;;  %s4451_s3 = smov 24  }
 0xbb7   : > { %3588 = vpow2.f32 %v2258_v63  ;;  %3378 = vmatpush3.bf16.msra.mxu0 %v2314_v2 }
 0xbb8   : > { %v2262_v6 = vmul.f32 1.442695, %v2247_v3  ;;  %3389 = vmatprep.subr.bf16.mxu0 %v3705_v19 }
 0xbba   : > { %3590 = vpow2.f32 %v2262_v6 }
 0xbbb   : > { %v3581_v7 = vpop.eup %3580 }
 0xbbc   : > { %v2270_v8 = vsel %vm999_vm3, %v3581_v7, 0.0  ;;  %v3583_v9 = vpop.eup %3582 }
 0xbbd   : > { %2271 = vadd.xlane.f32.xlu1 %v2270_v8  ;;  %v2276_v11 = vsel %vm999_vm3, %v3583_v9, 0.0 }
 0xbbf   : > { %v3585_v10 = vpop.eup %3584 }
 0xbc0   : > { %v2273_v12 = vsel %vm999_vm3, %v3585_v10, 0.0 }
 0xbc1   : > { %2277 = vadd.xlane.f32.xlu1 %v2276_v11  ;;  %2274 = vadd.xlane.f32.xlu0 %v2273_v12 }
 0xbc3   : > { %v3587_v13 = vpop.eup %3586 }
 0xbc4   : > { %v3589_v15 = vpop.eup %3588  ;;  %v2282_v16 = vsel %vm999_vm3, %v3587_v13, 0.0 }
 0xbc5   : > { %2283 = vadd.xlane.f32.xlu1 %v2282_v16  ;;  %v2279_v17 = vsel %vm999_vm3, %v3589_v15, 0.0 }
 0xbc6   : > { %2280 = vadd.xlane.f32.xlu0 %v2279_v17 }
 0xbc7   : > { %v3591_v18 = vpop.eup %3590 }
 0xbc8   : > { %v2285_v20 = vsel %vm999_vm3, %v3591_v18, 0.0 }
 0xbca   : > { %2286 = vadd.xlane.f32.xlu0 %v2285_v20 }
 0xbd6   : > { %2406 = vrot.lane.b32.xlu1 %v4225_v36, %s3711_s29 }
 0xbda   : > { %2455 = vrot.lane.b32.xlu1 %v4231_v37, %s3711_s29 }
 0xbdd   : > { %v2269_v41 = vpop.xlane.xlu0 %2268 }
 0xbde   : > { %3592 = vrcp.f32 %v2269_v41 }
 0xbe0   : > { %2357 = vrot.lane.b32.xlu0 %v4223_v35, %s3711_s29 }
 0xbe6   : > { %v2266_v21 = vpop.xlane.xlu1 %2265 }
 0xbe7   : > { %3594 = vrcp.f32 %v2266_v21 }
 0xbeb   : > { %v3593_v22 = vpop.eup %3592 }
 0xbec   : > { %v2297_v25 = vmul.f32 %v3593_v22, %v3577_v5 }
 0xbf4   : > { %v3595_v23 = vpop.eup %3594 }
 0xbf5   : > { %v2296_v24 = vmul.f32 %v3595_v23, %v3579_v49 }
 0xbf7   : > { %v2304_v27 = vpack.c.bf16 %v2297_v25, %v2296_v24 }
 0xbf9   : > { %3380 = vmatmul.mubr.msk.bf16.vlgmr.msra.gmra.mxu0 %vm999_vm3, %v2304_v27 }
 0xbfa   : > { %3391 = vmatprep.mubr.msk.bf16.mxu0 %vm3706_vm2, %v3705_v19 }
 0xc46   : > { %v2272_v36 = vpop.xlane.xlu1 %2271 }
 0xc47   : > { %3596 = vrcp.f32 %v2272_v36 }
 0xc4a   : > { %v2278_v37 = vpop.xlane.xlu1 %2277  ;;  %v2275_v29 = vpop.xlane.xlu0 %2274 }
 0xc4b   : > { %3598 = vrcp.f32 %v2275_v29 }
 0xc4c   : > { %3600 = vrcp.f32 %v2278_v37 }
 0xc4e   : > { %v2284_v35 = vpop.xlane.xlu1 %2283 }
 0xc4f   : > { %v2281_v58 = vpop.xlane.xlu0 %2280 }
 0xc50   : > { %3602 = vrcp.f32 %v2281_v58 }
 0xc51   : > { %3604 = vrcp.f32 %v2284_v35 }
 0xc52   : > { %v2407_v45 = vpop.permute.xlu1 %2406 }
 0xc53   : > { %v2412_v48 = vsel %vm1291_vm4, %v2407_v45, 0  ;;  %v2287_v31 = vpop.xlane.xlu0 %2286 }
 0xc54   : > { %3606 = vrcp.f32 %v2287_v31  ;;  %3390 = vmatpush3.bf16.msra.mxu0 %v2412_v48  ;;  %v3597_v32 = vpop.eup %3596 }
 0xc55   : > { %3401 = vmatprep.subr.bf16.mxu0 %v3705_v19  ;;  %v2298_v44 = vmul.f32 %v3597_v32, %v3581_v7 }
 0xc56   : > { %v2456_v49 = vpop.permute.xlu1 %2455 }
 0xc57   : > { %v2358_v34 = vpop.permute.xlu0 %2357  ;;  %v2461_v52 = vsel %vm1291_vm4, %v2456_v49, 0 }
 0xc58   : > { %v2363_v38 = vsel %vm1291_vm4, %v2358_v34, 0  ;;  %v3599_v39 = vpop.eup %3598 }
 0xc59   : > { %3384 = vmatpush3.bf16.msra.mxu1 %v2363_v38  ;;  %v2299_v5 = vmul.f32 %v3599_v39, %v3585_v10  ;;  %v3601_v47 = vpop.eup %3600 }
 0xc5a   : > { %3395 = vmatprep.subr.bf16.mxu1 %v3705_v19  ;;  %v2300_v53 = vmul.f32 %v3601_v47, %v3583_v9 }
 0xc5b   : > { %v2305_v50 = vpack.c.bf16 %v2299_v5, %v2298_v44 }
 0xc5d   : > { %v3603_v4 = vpop.eup %3602  ;;  %3386 = vmatmul.mubr.msk.bf16.vlgmr.msra.gmra.mxu1 %vm999_vm3, %v2305_v50  ;;  %v3514_v50 = vld [vmem:[%s3897_s26 + $0x8] sm:$0xff]  }
 0xc5e   : > { %v2301_v14 = vmul.f32 %v3603_v4, %v3589_v15  ;;  %v3605_v28 = vpop.eup %3604  ;;  %3396 = vmatpush3.bf16.msra.mxu1 %v2461_v52  ;;  %3397 = vmatprep.mubr.msk.bf16.mxu1 %vm3706_vm2, %v3705_v19  ;;  %v3515_v4 = vld [vmem:[%s3897_s26] sm:$0xff]   ;;  %s4453_s26 = sadd.s32 4294967295, %s4452_s20  }
 0xc5f   : > { %3409 = vmatprep.subr.bf16.mxu1 %v3705_v19  ;;  %v2302_v54 = vmul.f32 %v3605_v28, %v3587_v13  ;;  %p4375_p3 = scmp.eq.s32.totalorder %s4453_s26, 1 }
 0xc60   : > { %v2306_v51 = vpack.c.bf16 %v2301_v14, %v2300_v53 }
 0xc61   : > { %v3607_v30 = vpop.eup %3606 }
 0xc62   : > { %3392 = vmatmul.mubr.msk.bf16.vlgmr.msra.gmra.mxu0 %vm999_vm3, %v2306_v51  ;;  %v2303_v59 = vmul.f32 %v3607_v30, %v3591_v18 }
 0xc63   : > { %3405 = vmatprep.mubr.msk.bf16.mxu0 %vm3706_vm2, %v3705_v19  ;;  %3402 = vmatpush3.bf16.msra.mxu0 %v3512_v0 }
 0xc64   : > { %v2307_v55 = vpack.c.bf16 %v2303_v59, %v2302_v54  ;;  %3403 = vmatprep.subr.bf16.mxu0 %v3705_v19 }
 0xc66   : > { %3398 = vmatmul.mubr.msk.bf16.vlgmr.msra.gmra.mxu1 %vm999_vm3, %v2307_v55 }
 0xc67   : > { %3413 = vmatprep.mubr.msk.bf16.mxu1 %vm3706_vm2, %v3705_v19  ;;  %3404 = vmatpush3.bf16.msra.mxu0 %v3513_v1  ;;  %v3516_v1 = vld [vmem:[%s3907_s24 + $0x38] sm:$0xff]  }
 0xc68   : > { %3417 = vmatprep.subr.bf16.mxu0 %v3705_v19  ;;  %3410 = vmatpush3.bf16.msra.mxu1 %v3514_v50 }
 0xc69   : > { %3411 = vmatprep.subr.bf16.mxu1 %v3705_v19 }
 0xc6c   : > { %3412 = vmatpush3.bf16.msra.mxu1 %v3515_v4 }
 0xcb9   : > { %v2350_v56 = vpop.f32.mrf.mxu0 }
 0xcbb   : > { %v3381_v60 = vpop.f32.mrf.mxu0 }
 0xcbd   : > { %v2353_v42 = vpop.f32.mrf.mxu0 }
 0xcbe   : > { %v2504_v61 = vpack.c.bf16 %v2353_v42, %v2350_v56 }
 0xcbf   : > { %v3382_v63 = vpop.f32.mrf.mxu0 }
 0xd1d   : > { %v2399_v2 = vpop.f32.mrf.mxu1 }
 0xd1f   : > { %v3387_v3 = vpop.f32.mrf.mxu1 }
 0xd20   : > { %v3519_v3 = vld [vmem:[%s3907_s24 + $0x20] sm:$0xff]  }
 0xd21   : > { %v2402_v6 = vpop.f32.mrf.mxu1 }
 0xd22   : > { %v2448_v7 = vpop.f32.mrf.mxu0  ;;  %v2505_v8 = vpack.c.bf16 %v2402_v6, %v2399_v2  ;;  %v3517_v2 = vld [vmem:[%s3907_s24 + $0x30] sm:$0xff]  }
 0xd23   : > { %v3388_v9 = vpop.f32.mrf.mxu1  ;;  %v3521_v6 = vld [vmem:[%s3907_s24 + $0x10] sm:$0xff]  }
 0xd24   : > { %v3393_v10 = vpop.f32.mrf.mxu0  ;;  %2509 = vrot.lane.b32.xlu1 %v2505_v8, %s3712_s18  ;;  %v3523_v8 = vld [vmem:[%s3907_s24] sm:$0xff]  }
 0xd26   : > { %v2451_v11 = vpop.f32.mrf.mxu0  ;;  %v2497_v12 = vpop.f32.mrf.mxu1 }
 0xd27   : > { %v2506_v13 = vpack.c.bf16 %v2451_v11, %v2448_v7  ;;  %v3522_v7 = vld [vmem:[%s3907_s24 + $0x8] sm:$0xff]  }
 0xd28   : > { %v3394_v15 = vpop.f32.mrf.mxu0  ;;  %v3399_v16 = vpop.f32.mrf.mxu1 }
 0xd29   : > { %2512 = vrot.lane.b32.xlu0 %v2506_v13, %s3713_s8 }
 0xd2a   : > { %v2500_v17 = vpop.f32.mrf.mxu1 }
 0xd2b   : > { %v2507_v18 = vpack.c.bf16 %v2500_v17, %v2497_v12 }
 0xd2c   : > { %v3400_v20 = vpop.f32.mrf.mxu1 }
 0xd2d   : > { %2515 = vrot.lane.b32.xlu1 %v2507_v18, %s4451_s3 }
 0xd96   : > { %v2510_v41 = vpop.permute.xlu1 %2509 }
 0xd97   : > { %v2519_v22 = vsel %vm999_vm3, %v2504_v61, %v2510_v41 }
 0xd9b   : > { %v2513_v21 = vpop.permute.xlu0 %2512 }
 0xd9c   : > { %v2521_v23 = vsel %vm1499_vm5, %v2519_v22, %v2513_v21 }
 0xd9f   : > { %v2516_v24 = vpop.permute.xlu1 %2515 }
 0xda0   : > { %v2523_v25 = vsel %vm1502_vm6, %v2521_v23, %v2516_v24 }
 0xda1   : > { %3406 = vmatmul.mubr.msk.bf16.vlgmr.msra.gmra.mxu0 %vm799_vm1, %v2523_v25 }
 0xda2   : > { %3433 = vmatprep.mubr.msk.bf16.mxu0 %vm3706_vm2, %v3705_v19  ;;  %3418 = vmatpush3.bf16.msra.mxu0 %v3516_v1 }
 0xda3   : > { %3419 = vmatprep.subr.bf16.mxu0 %v3705_v19 }
 0xda6   : > { %3420 = vmatpush3.bf16.msra.mxu0 %v3517_v2 }
 0xda7   : > { %3421 = vmatprep.subr.bf16.mxu0 %v3705_v19 }
 0xe61   : > { %v2583_v27 = vpop.f32.mrf.mxu0 }
 0xe62   : > { %v2584_v36 = vadd.f32 %v4111_v33, %v2583_v27 }
 0xe63   : > { %v3407_v37 = vpop.f32.mrf.mxu0 }
 0xe64   : > { %v4330_v29 = vadd.f32 %v2584_v36, %v4129_v46 }
 0xe65   : > { %v2586_v35 = vpop.f32.mrf.mxu0 }
 0xe66   : > { %v2587_v58 = vadd.f32 %v4111_v33, %v2586_v35  ;;  %v2594_v45 = vsel %vm799_vm1, %v4330_v29, 0.0 }
 0xe67   : > { %2595 = vadd.xlane.f32.xlu0 %v2594_v45  ;;  %v3408_v48 = vpop.f32.mrf.mxu0 }
 0xe68   : > { %v4336_v31 = vadd.f32 %v2587_v58, %v4123_v43 }
 0xe6a   : > { %v2597_v32 = vsel %vm799_vm1, %v4336_v31, 0.0 }
 0xe6b   : > { %2598 = vadd.xlane.f32.xlu1 %v2597_v32 }
 0xef0   : > { %v2596_v34 = vpop.xlane.xlu0 %2595 }
 0xef1   : > { %v2600_v46 = vmul.f32 0.03125, %v2596_v34 }
 0xef3   : > { %v2602_v38 = vsub.f32 %v4330_v29, %v2600_v46 }
 0xef4   : > { %v2599_v39 = vpop.xlane.xlu1 %2598 }
 0xef5   : > { %v2601_v33 = vmul.f32 0.03125, %v2599_v39  ;;  %v2604_v44 = vmul.f32 %v2602_v38, %v2602_v38 }
 0xef7   : > { %v2603_v5 = vsub.f32 %v4336_v31, %v2601_v33  ;;  %v2606_v47 = vsel %vm799_vm1, %v2604_v44, 0.0 }
 0xef8   : > { %2607 = vadd.xlane.f32.xlu0 %v2606_v47 }
 0xef9   : > { %v2605_v49 = vmul.f32 %v2603_v5, %v2603_v5 }
 0xefb   : > { %v2609_v43 = vsel %vm799_vm1, %v2605_v49, 0.0 }
 0xefc   : > { %2610 = vadd.xlane.f32.xlu0 %v2609_v43 }
 0xf81   : > { %v2608_v52 = vpop.xlane.xlu0 %2607 }
 0xf82   : > { %v2612_v53 = vmul.f32 0.03125, %v2608_v52 }
 0xf84   : > { %v2614_v14 = vadd.f32 1e-05, %v2612_v53 }
 0xf85   : > { %v2611_v28 = vpop.xlane.xlu0 %2610 }
 0xf86   : > { %3608 = vrsqrt.f32 %v2614_v14  ;;  %v2613_v51 = vmul.f32 0.03125, %v2611_v28 }
 0xf88   : > { %v2615_v30 = vadd.f32 1e-05, %v2613_v51 }
 0xf8a   : > { %3610 = vrsqrt.f32 %v2615_v30 }
 0xf93   : > { %v3609_v54 = vpop.eup %3608 }
 0xf94   : > { %v2618_v59 = vmul.f32 %v3609_v54, %v2602_v38 }
 0xf96   : > { %v2626_v60 = vmul.f32 %v4150_v26, %v2618_v59 }
 0xf97   : > { %v3611_v55 = vpop.eup %3610 }
 0xf98   : > { %v2619_v56 = vmul.f32 %v3611_v55, %v2603_v5  ;;  %v2634_v61 = vadd.f32 %v4158_v57, %v2626_v60 }
 0xf9a   : > { %v2627_v42 = vmul.f32 %v4150_v26, %v2619_v56  ;;  %v3518_v26 = vld [vmem:[%s3907_s24 + $0x28] sm:$0xff]  }
 0xf9b   : > { %3422 = vmatpush3.bf16.msra.mxu0 %v3518_v26 }
 0xf9c   : > { %v2635_v63 = vadd.f32 %v4158_v57, %v2627_v42  ;;  %3423 = vmatprep.subr.bf16.mxu0 %v3705_v19  ;;  %v3520_v57 = vld [vmem:[%s3907_s24 + $0x18] sm:$0xff]   ;;  %s2847_s24 = sshll.u32 %s3715_s27, 4  ;;  %s2848_s24 = int_to_ptr.vmem [resolvable:$true] %s2847_s24 }
 0xf9d   : > { %s3646_s21 = scalar_lea.vmem %s2848_s24, 512  ;;  %p3653_p7 = scmp.lt.s32.totalorder %s2848_s24, %s2848_s24 }
 0xf9e   : > { %v2636_v0 = vpack.c.bf16 %v2635_v63, %v2634_v61  ;;  %p3647_p4 = scmp.ne.s32.totalorder %s2848_s24, %s3646_s21  ;;  %p3654_p8 = scmp.lt.s32.totalorder %s3646_s21, %s3646_s21 }
 0xf9f   : > { %3424 = vmatpush3.bf16.msra.mxu0 %v3519_v3 }
 0xfa0   : > { %3414 = vmatmul.mubr.msk.bf16.vlgmr.msra.gmra.mxu1 %vm799_vm1, %v2636_v0  ;;  %3425 = vmatprep.subr.bf16.mxu0 %v3705_v19  ;;  %p3648_p5 = pnand %p3647_p4, %p4375_p3  ;;  %p3655_p9 = por %p3654_p8, %p3653_p7 }
 0xfa2   : > { %p3649_p6 = pneg %p3648_p5 }
 0xfa3   : > { %3426 = vmatpush3.bf16.msra.mxu0 %v3520_v57 }
 0xfa4   : > { %3427 = vmatprep.subr.bf16.mxu0 %v3705_v19  ;;  %p3656_p10 = pnand %p3655_p9, %p3649_p6 }
 0xfa7   : > { %3428 = vmatpush3.bf16.msra.mxu0 %v3521_v6 }
 0xfa8   : > { %3429 = vmatprep.subr.bf16.mxu0 %v3705_v19 }
 0xfab   : > { %3430 = vmatpush3.bf16.msra.mxu0 %v3522_v7 }
 0xfac   : > { %3431 = vmatprep.subr.bf16.mxu0 %v3705_v19 }
 0xfaf   : > { %3432 = vmatpush3.bf16.msra.mxu0 %v3523_v8 }
0x1060   : > { %v2697_v9 = vpop.f32.mrf.mxu1 }
0x1061   : > { %v2698_v10 = vadd.f32 %v4205_v62, %v2697_v9 }
0x1062   : > { %v3415_v11 = vpop.f32.mrf.mxu1 }
0x1063   : > { %v3143_v12 = vmul.f32 -1.702, %v2698_v10 }
0x1064   : > { %v2700_v13 = vpop.f32.mrf.mxu1 }
0x1065   : > { %v2708_v15 = vmul.f32 1.442695, %v3143_v12  ;;  %v2701_v16 = vadd.f32 %v4205_v62, %v2700_v13 }
0x1066   : > { %v3416_v17 = vpop.f32.mrf.mxu1 }
0x1067   : > { %3612 = vpow2.f32 %v2708_v15  ;;  %v3144_v18 = vmul.f32 -1.702, %v2701_v16 }
0x1069   : > { %v2710_v20 = vmul.f32 1.442695, %v3144_v18 }
0x106b   : > { %3614 = vpow2.f32 %v2710_v20 }
0x1074   : > { %v3613_v41 = vpop.eup %3612 }
0x1075   : > { %v2712_v21 = vadd.f32 1.0, %v3613_v41 }
0x1077   : > { %3616 = vrcp.f32 %v2712_v21 }
0x1078   : > { %v3615_v22 = vpop.eup %3614 }
0x1079   : > { %v2713_v19 = vadd.f32 1.0, %v3615_v22 }
0x107b   : > { %3618 = vrcp.f32 %v2713_v19 }
0x1084   : > { %v3617_v23 = vpop.eup %3616 }
0x1085   : > { %v2718_v25 = vmul.f32 %v3617_v23, %v2698_v10 }
0x1088   : > { %v3619_v24 = vpop.eup %3618 }
0x1089   : > { %v2719_v27 = vmul.f32 %v3619_v24, %v2701_v16 }
0x108b   : > { %v2720_v36 = vpack.c.bf16 %v2719_v27, %v2718_v25 }
0x108d   : > { %3434 = vmatmul.mubr.bf16.vlgmr.msra.gmra.mxu0 %v2720_v36 }
0x114d   : > { %v2826_v37 = vpop.f32.mrf.mxu0 }
0x114e   : > { %v2827_v62 = vadd.f32 %v4248_v40, %v2826_v37 }
0x114f   : > { %v3435_v35 = vpop.f32.mrf.mxu0 }
0x1150   : > { %v2833_v58 = vadd.f32 %v2827_v62, %v4330_v29 }
0x1151   : > { %v2829_v45 = vpop.f32.mrf.mxu0 }
0x1152   : > { %2835 = vst.msk [vmem:[#allocation5 + $0x10] sm:$0xff] %vm799_vm1, %v2833_v58  ;;  %v2830_v48 = vadd.f32 %v4248_v40, %v2829_v45 }
0x1153   : > { %v3436_v32 = vpop.f32.mrf.mxu0 }
0x1154   : > { %v2834_v34 = vadd.f32 %v2830_v48, %v4336_v31 }
0x1156   : > { %2836 = vst.msk [vmem:[#allocation5 + $0x18] sm:$0xff] %vm799_vm1, %v2834_v34 }
0x1157   : > { %3659 = shalt.err (!%p3656_p10)
}
0x1158   : > { %s3716_s28 = smov 128   ;;  %s4455_s29 = sld [smem:[#allocation18_spill]] }
0x115e   : > { %3442 = dma.vmem_to_hbm [thread:$0]  (%p4375_p3), %s2848_s24, 512, %s4455_s29, [#allocation4], %s3716_s28, %s3716_s28, %s3712_s18  }
0x115f   : > { %3687 = dma.done.wait (%p4375_p3), [#allocation4], 512  }
0x1160   : > { %3689 = vsyncadd (%p4375_p3), [#allocation4], 4294966784 }
0x1161 PF: > { %s4456_s8 = sld [smem:[#allocation9_spill]] }
0x1162   : > { %s4457_s21 = sld [smem:[#allocation8_spill]] }
0x1163   : > { %s4458_s22 = sld [smem:[#allocation10_spill]] }
0x1167   : > { %s28_s23 = sadd.s32 1, %s4456_s8  }
0x1168   : > { %p25_p11 = scmp.ge.s32.totalorder %s28_s23, 4  }
0x116a   :  { %27 = sbr.rel (!%p25_p11) target bundleno = 12 (0xc), region = 166 }
0x116f   :  { %2863 = vsyncpa [#allocation3], 1 }
0x1170   :  { %2865 = vsyncpa [#allocation3 + $0x1], 1 }
0x1171   :  { %2866 = vsyncpa [#allocation4], 1 }
0x1172   :  { %2868 = vsyncpa [#allocation4 + $0x1], 1 }

</bundles_post_ra>
